<compile_context>
chip_gen: v5e
topology: v5e:2x2
jax: 0.10.0
libtpu: 0.0.40
codegen_flags: <defaults>
</compile_context>

<pallas_src>
import numpy as np
from functools import partial

import jax
import jax.numpy as jnp
from jax.experimental import pallas as pl
from jax.experimental.pallas import tpu as pltpu

PAD = 0                      # Constants.PAD
MXU_DTYPE = jnp.bfloat16     # matmul-input dtype (f32 accumulation); jnp.float32 to disable

LAYER_WKEYS = ['wqkv', 'bqkv', 'fcw', 'fcb', 'ln1g', 'ln1b',
               'wq2', 'bq2', 'wkv2', 'bkv2', 'fcw2', 'fcb2', 'ln2g', 'ln2b',
               'w1', 'b1', 'w2', 'b2', 'ln3g', 'ln3b']


# ----------------------------- Pallas kernel ---------------------------------

def _decoder_layer_kernel(n_head, d_k, d_v,
                          x_ref, enc_ref, npm_ref, tkp_ref, skp_ref,
                          wqkv_ref, bqkv_ref, fcw_ref, fcb_ref, ln1g_ref, ln1b_ref,
                          wq2_ref, bq2_ref, wkv2_ref, bkv2_ref, fcw2_ref, fcb2_ref,
                          ln2g_ref, ln2b_ref,
                          w1_ref, b1_ref, w2_ref, b2_ref, ln3g_ref, ln3b_ref,
                          o_ref):
    Bb, Sq, D = x_ref.shape
    Sk = enc_ref.shape[1]
    D_enc = enc_ref.shape[2]
    H, dk, dv = n_head, d_k, d_v
    n_tok = Bb * Sq
    neg = jnp.float32(-1e9)
    scale = jnp.float32(1.0 / np.sqrt(d_k))
    cdt = MXU_DTYPE

    x = x_ref[...]                         # (Bb, Sq, D) f32
    x2 = x.reshape(n_tok, D)               # flatten tokens: big-M matmuls
    npm2 = npm_ref[...]                    # (Bb*Sq, 1) non-pad mask (pre-flattened on host)

    # --- additive attention biases (built in VMEM; no dense (B,S,S) HBM mask traffic) ---
    tkp = tkp_ref[...]                                             # (Bb, 1, Sq) 1.0 = tgt PAD key
    rows = jax.lax.broadcasted_iota(jnp.int32, (Sq, Sq), 0)
    cols = jax.lax.broadcasted_iota(jnp.int32, (Sq, Sq), 1)
    slf_bias = (jnp.where(tkp > 0.5, neg, 0.0)
                + jnp.where(cols > rows, neg, 0.0)[None, :, :])    # key-pad OR causal, (Bb,Sq,Sq)
    enc_bias = jnp.where(skp_ref[...] > 0.5, neg, 0.0)             # (Bb, 1, Sk) src key-pad

    def layer_norm(t, g_ref, b_ref):
        mu = jnp.mean(t, axis=-1, keepdims=True)
        var = jnp.mean((t - mu) ** 2, axis=-1, keepdims=True)
        return (t - mu) * jax.lax.rsqrt(var + 1e-5) * g_ref[...] + b_ref[...]

    def mha(q3, k3, v3, bias, fc_ref, fc_bias):
        # q3: (Bb, Sq, H*dk) pre-scaled by 1/sqrt(dk); k3: (Bb, Sk', H*dk); v3: (Bb, Sk', H*dv).
        # Head concat folded into the output projection: accumulate into a (tokens, D) acc.
        acc = jnp.zeros((n_tok, D), jnp.float32)
        for h in range(H):                         # static unroll (n_head is small)
            qh = q3[:, :, h * dk:(h + 1) * dk]
            kh = k3[:, :, h * dk:(h + 1) * dk]
            vh = v3[:, :, h * dv:(h + 1) * dv]
            s = jnp.einsum('bqd,bkd->bqk', qh.astype(cdt), kh.astype(cdt),
                           preferred_element_type=jnp.float32) + bias
            m = jnp.max(s, axis=-1, keepdims=True)
            p = jnp.exp(s - m)
            attn = p * pl.reciprocal(jnp.sum(p, axis=-1, keepdims=True), approx=True)
            ctx = jnp.einsum('bqk,bkd->bqd', attn.astype(cdt), vh.astype(cdt),
                             preferred_element_type=jnp.float32)
            acc = acc + jnp.dot(ctx.reshape(n_tok, dv).astype(cdt),
                                fc_ref[h * dv:(h + 1) * dv, :],
                                preferred_element_type=jnp.float32)
        return acc + fc_bias

    # ---- masked multi-head self-attention + residual + LayerNorm + non-pad mask ----
    qkv = jnp.dot(x2.astype(cdt), wqkv_ref[...],
                  preferred_element_type=jnp.float32) + bqkv_ref[...]     # fused QKV
    q = (qkv[:, :H * dk] * scale).reshape(Bb, Sq, H * dk)
    k = qkv[:, H * dk:2 * H * dk].reshape(Bb, Sq, H * dk)
    v = qkv[:, 2 * H * dk:].reshape(Bb, Sq, H * dv)
    slf_out = mha(q, k, v, slf_bias, fcw_ref, fcb_ref[...])
    y2 = layer_norm(slf_out + x2, ln1g_ref, ln1b_ref) * npm2

    # ---- encoder-decoder cross-attention + residual + LayerNorm + non-pad mask ----
    enc2 = enc_ref[...].reshape(Bb * Sk, D_enc)
    q2 = (jnp.dot(y2.astype(cdt), wq2_ref[...],
                  preferred_element_type=jnp.float32) + bq2_ref[...]) * scale
    kv2 = jnp.dot(enc2.astype(cdt), wkv2_ref[...],
                  preferred_element_type=jnp.float32) + bkv2_ref[...]     # fused K/V
    k2 = kv2[:, :H * dk].reshape(Bb, Sk, H * dk)
    v2 = kv2[:, H * dk:].reshape(Bb, Sk, H * dv)
    enc_out = mha(q2.reshape(Bb, Sq, H * dk), k2, v2, enc_bias, fcw2_ref, fcb2_ref[...])
    z2 = layer_norm(enc_out + y2, ln2g_ref, ln2b_ref) * npm2

    # ---- position-wise feed-forward (Conv1d k=1 == matmul) + residual + LN + mask ----
    h1 = jnp.maximum(jnp.dot(z2.astype(cdt), w1_ref[...],
                             preferred_element_type=jnp.float32) + b1_ref[...], 0.0)
    h2 = jnp.dot(h1.astype(cdt), w2_ref[...],
                 preferred_element_type=jnp.float32) + b2_ref[...]
    out2 = layer_norm(h2 + z2, ln3g_ref, ln3b_ref) * npm2

    o_ref[...] = out2.reshape(Bb, Sq, D)


def decoder_layer_pallas(x, enc_output, non_pad_2d, tgt_kp, src_kp, fused,
                         n_head, d_k, d_v, block_b=None):
    B, S, D = x.shape
    S_src, D_enc = enc_output.shape[1], enc_output.shape[2]
    if block_b is None:
        # Pack enough sequences per grid step that token-parallel matmuls see
        # M = block_b*S rows (target ~256); per-step pipeline overhead amortized.
        target = max(1, -(-256 // S))
        block_b = 1
        for cand in range(1, B + 1):
            if B % cand == 0 and cand <= target:
                block_b = cand
    weights = [fused[k] for k in LAYER_WKEYS]

    in_specs = [
        pl.BlockSpec((block_b, S, D), lambda b: (b, 0, 0)),           # decoder activations
        pl.BlockSpec((block_b, S_src, D_enc), lambda b: (b, 0, 0)),   # encoder output
        pl.BlockSpec((block_b * S, 1), lambda b: (b, 0)),             # non-pad mask (flattened)
        pl.BlockSpec((block_b, 1, S), lambda b: (b, 0, 0)),           # tgt key-pad row
        pl.BlockSpec((block_b, 1, S_src), lambda b: (b, 0, 0)),       # src key-pad row
    ] + [
        # Weights: constant block index across the grid (Pallas skips re-fetching them).
        # TODO(synk): pipeline_mode=pl.Buffered(1) would halve their VMEM on 64-MiB parts.
        pl.BlockSpec(w.shape, lambda b: (0, 0)) for w in weights
    ]
    out_spec = pl.BlockSpec((block_b, S, D), lambda b: (b, 0, 0))

    kernel = partial(_decoder_layer_kernel, n_head, d_k, d_v)
    return pl.pallas_call(
        kernel,
        out_shape=jax.ShapeDtypeStruct((B, S, D), jnp.float32),
        grid=(B // block_b,),
        in_specs=in_specs,
        out_specs=out_spec,
        compiler_params=pltpu.CompilerParams(
            dimension_semantics=("parallel",),
            vmem_limit_bytes=32 * 1024 * 1024),
    )(x, enc_output, non_pad_2d, tgt_kp, src_kp, *weights)


# ----------------------------- plain-JAX glue ---------------------------------

def get_sinusoid_encoding_table(n_position, d_hid, padding_idx=None):
    def cal_angle(position, hid_idx):
        return position / np.power(10000, 2 * (hid_idx // 2) / d_hid)

    def get_posi_angle_vec(position):
        return [cal_angle(position, j) for j in range(d_hid)]

    table = np.array([get_posi_angle_vec(p) for p in range(n_position)])
    table[:, 0::2] = np.sin(table[:, 0::2])
    table[:, 1::2] = np.cos(table[:, 1::2])
    if padding_idx is not None:
        table[padding_idx] = 0.0
    return jnp.asarray(table, dtype=jnp.float32)


def _bf16_round(a):
    # Canonical weights exactly representable in bf16 (kernel's bf16 copies are lossless).
    return a.astype(jnp.bfloat16).astype(jnp.float32)


def init_decoder_params(key, n_tgt_vocab, len_max_seq, d_word_vec, n_layers,
                        n_head, d_k, d_v, d_model, d_inner, d_enc=None):
    d_enc = d_model if d_enc is None else d_enc
    keys = jax.random.split(key, 1 + n_layers)
    word_emb = _bf16_round(jax.random.normal(keys[0], (n_tgt_vocab, d_word_vec), jnp.float32) * 0.02)
    word_emb = word_emb.at[PAD].set(0.0)
    pos_table = get_sinusoid_encoding_table(len_max_seq + 1, d_word_vec, padding_idx=0)

    def w(k_, shape, s=0.05):
        return _bf16_round(jax.random.normal(k_, shape, jnp.float32) * s)

    layers = []
    for li in range(n_layers):
        lk = jax.random.split(keys[1 + li], 10)
        zeros = lambda n: jnp.zeros((1, n), jnp.float32)
        ones = lambda n: jnp.ones((1, n), jnp.float32)
        p = {
            'wq': w(lk[0], (d_model, n_head * d_k)), 'bq': zeros(n_head * d_k),
            'wk': w(lk[1], (d_model, n_head * d_k)), 'bk': zeros(n_head * d_k),
            'wv': w(lk[2], (d_model, n_head * d_v)), 'bv': zeros(n_head * d_v),
            'fc': w(lk[3], (n_head * d_v, d_model)), 'fcb': zeros(d_model),
            'ln1g': ones(d_model), 'ln1b': zeros(d_model),
            'wq2': w(lk[4], (d_model, n_head * d_k)), 'bq2': zeros(n_head * d_k),
            'wk2': w(lk[5], (d_enc, n_head * d_k)), 'bk2': zeros(n_head * d_k),
            'wv2': w(lk[6], (d_enc, n_head * d_v)), 'bv2': zeros(n_head * d_v),
            'fc2': w(lk[7], (n_head * d_v, d_model)), 'fcb2': zeros(d_model),
            'ln2g': ones(d_model), 'ln2b': zeros(d_model),
            'w1': w(lk[8], (d_model, d_inner)), 'b1': zeros(d_inner),
            'w2': w(lk[9], (d_inner, d_model)), 'b2': zeros(d_model),
            'ln3g': ones(d_model), 'ln3b': zeros(d_model),
        }
        layers.append(p)
    return {'word_emb': word_emb, 'pos_table': pos_table, 'layers': layers}


def fuse_layer_params(p):
    cat = lambda *a: jnp.concatenate(a, axis=1)
    return {
        'wqkv': cat(p['wq'], p['wk'], p['wv']).astype(MXU_DTYPE),
        'bqkv': cat(p['bq'], p['bk'], p['bv']),
        'fcw': p['fc'].astype(MXU_DTYPE), 'fcb': p['fcb'],
        'ln1g': p['ln1g'], 'ln1b': p['ln1b'],
        'wq2': p['wq2'].astype(MXU_DTYPE), 'bq2': p['bq2'],
        'wkv2': cat(p['wk2'], p['wv2']).astype(MXU_DTYPE),
        'bkv2': cat(p['bk2'], p['bv2']),
        'fcw2': p['fc2'].astype(MXU_DTYPE), 'fcb2': p['fcb2'],
        'ln2g': p['ln2g'], 'ln2b': p['ln2b'],
        'w1': p['w1'].astype(MXU_DTYPE), 'b1': p['b1'],
        'w2': p['w2'].astype(MXU_DTYPE), 'b2': p['b2'],
        'ln3g': p['ln3g'], 'ln3b': p['ln3b'],
    }


def decoder_forward(params, tgt_seq, tgt_pos, src_seq, enc_output, n_head, d_k, d_v):
    B, S = tgt_seq.shape
    non_pad_2d = (tgt_seq != PAD).astype(jnp.float32).reshape(B * S, 1)   # get_non_pad_mask
    tgt_kp = (tgt_seq == PAD).astype(jnp.float32)[:, None, :]             # tgt key-pad row
    src_kp = (src_seq == PAD).astype(jnp.float32)[:, None, :]             # src key-pad row

    dec = (params['word_emb'][tgt_seq] + params['pos_table'][tgt_pos]).astype(jnp.float32)
    # TODO(synk): list-valued enc_output (per-layer (enc_repr, enc_non_pad) with d_enc) and
    #             return_attns attention-map outputs are not supported by the fused kernel.
    for p in params['layers']:
        fused = fuse_layer_params(p)
        dec = decoder_layer_pallas(dec, enc_output, non_pad_2d, tgt_kp, src_kp,
                                   fused, n_head, d_k, d_v)
    return dec


# ----------------------------- pure-JAX reference ------------------------------

def _layer_norm_ref(x, g, b, eps=1e-5):
    mu = jnp.mean(x, axis=-1, keepdims=True)
    var = jnp.mean((x - mu) ** 2, axis=-1, keepdims=True)
    return (x - mu) / jnp.sqrt(var + eps) * g + b


def _ref_mha(q_in, kv_in, mask, wq, bq, wk, bk, wv, bv, fcw, fcb, g, bln, n_head, d_k, d_v):
    q = q_in @ wq + bq[0]
    k = kv_in @ wk + bk[0]
    v = kv_in @ wv + bv[0]
    outs = []
    for h in range(n_head):
        qh = q[:, h * d_k:(h + 1) * d_k]
        kh = k[:, h * d_k:(h + 1) * d_k]
        vh = v[:, h * d_v:(h + 1) * d_v]
        s = qh @ kh.T / np.sqrt(d_k)
        s = jnp.where(mask > 0.5, jnp.float32(-1e9), s)
        outs.append(jax.nn.softmax(s, axis=-1) @ vh)
    c = jnp.concatenate(outs, axis=-1)
    return _layer_norm_ref(c @ fcw + fcb[0] + q_in, g[0], bln[0])


def ref_decoder_forward(params, tgt_seq, tgt_pos, src_seq, enc_output, n_head, d_k, d_v):
    B, S = tgt_seq.shape
    S_src = src_seq.shape[1]
    npm = (tgt_seq != PAD).astype(jnp.float32)[:, :, None]
    tgt_kp = (tgt_seq == PAD).astype(jnp.float32)[:, None, :]
    causal = jnp.triu(jnp.ones((S, S), jnp.float32), k=1)[None]
    slf_mask = jnp.clip(jnp.broadcast_to(tgt_kp, (B, S, S)) + causal, 0.0, 1.0)
    src_kp = (src_seq == PAD).astype(jnp.float32)[:, None, :]
    enc_mask = jnp.broadcast_to(src_kp, (B, S, S_src))

    dec = (params['word_emb'][tgt_seq] + params['pos_table'][tgt_pos]).astype(jnp.float32)
    for p in params['layers']:
        def one(xb, eb, npmb, smb, emb_):
            y = _ref_mha(xb, xb, smb, p['wq'], p['bq'], p['wk'], p['bk'], p['wv'], p['bv'],
                         p['fc'], p['fcb'], p['ln1g'], p['ln1b'], n_head, d_k, d_v) * npmb
            z = _ref_mha(y, eb, emb_, p['wq2'], p['bq2'], p['wk2'], p['bk2'], p['wv2'], p['bv2'],
                         p['fc2'], p['fcb2'], p['ln2g'], p['ln2b'], n_head, d_k, d_v) * npmb
            h1 = jnp.maximum(z @ p['w1'] + p['b1'][0], 0.0)
            return _layer_norm_ref(h1 @ p['w2'] + p['b2'][0] + z,
                                   p['ln3g'][0], p['ln3b'][0]) * npmb
        dec = jax.vmap(one)(dec, enc_output, npm, slf_mask, enc_mask)
    return dec


# ----------------------------------- main --------------------------------------

if __name__ == "__main__":
    # hyper-params (small, consistent with the module __init__)
    n_tgt_vocab, len_max_seq = 20, 8
    d_word_vec = d_model = 32
    n_layers, n_head, d_k, d_v, d_inner = 2, 2, 16, 16, 64
    B, S_tgt, S_src = 2, len_max_seq, len_max_seq

    key = jax.random.PRNGKey(0)
    kp, ke = jax.random.split(key)
    params = init_decoder_params(kp, n_tgt_vocab, len_max_seq, d_word_vec,
                                 n_layers, n_head, d_k, d_v, d_model, d_inner)

    # deterministic inputs (0 == PAD)
    tgt_seq = jnp.array([[3, 7, 2, 9, 5, 1, 0, 0],
                         [4, 6, 8, 2, 0, 0, 0, 0]], dtype=jnp.int32)
    src_seq = jnp.array([[5, 2, 8, 3, 1, 0, 0, 0],
                         [7, 4, 2, 6, 9, 1, 0, 0]], dtype=jnp.int32)
    positions = jnp.arange(1, S_tgt + 1, dtype=jnp.int32)[None, :]
    tgt_pos = jnp.where(tgt_seq != PAD, positions, 0)
    enc_output = jax.random.normal(ke, (B, S_src, d_model), jnp.float32) * 0.1

    out = decoder_forward(params, tgt_seq, tgt_pos, src_seq, enc_output, n_head, d_k, d_v)
    out = jax.block_until_ready(out)

    ref = ref_decoder_forward(params, tgt_seq, tgt_pos, src_seq, enc_output, n_head, d_k, d_v)
    # Tolerance loosened vs the pure-f32 reference because the kernel feeds bf16 into the
    # MXU (f32 accumulation) and uses the EUP approx reciprocal for the softmax denominator.
    np.testing.assert_allclose(np.asarray(out), np.asarray(ref), rtol=5e-2, atol=5e-2)

    print("KERNEL_OK")
</pallas_src>

<mosaic_0001>
module attributes {stable_mosaic.version = 11 : i64} {
  func.func @_decoder_layer_kernel(%arg0: i32, %arg1: memref<2x8x32xf32, #tpu.memory_space<vmem>>, %arg2: memref<2x8x32xf32, #tpu.memory_space<vmem>>, %arg3: memref<16x1xf32, #tpu.memory_space<vmem>>, %arg4: memref<2x1x8xf32, #tpu.memory_space<vmem>>, %arg5: memref<2x1x8xf32, #tpu.memory_space<vmem>>, %arg6: memref<32x96xbf16, #tpu.memory_space<vmem>>, %arg7: memref<1x96xf32, #tpu.memory_space<vmem>>, %arg8: memref<32x32xbf16, #tpu.memory_space<vmem>>, %arg9: memref<1x32xf32, #tpu.memory_space<vmem>>, %arg10: memref<1x32xf32, #tpu.memory_space<vmem>>, %arg11: memref<1x32xf32, #tpu.memory_space<vmem>>, %arg12: memref<32x32xbf16, #tpu.memory_space<vmem>>, %arg13: memref<1x32xf32, #tpu.memory_space<vmem>>, %arg14: memref<32x64xbf16, #tpu.memory_space<vmem>>, %arg15: memref<1x64xf32, #tpu.memory_space<vmem>>, %arg16: memref<32x32xbf16, #tpu.memory_space<vmem>>, %arg17: memref<1x32xf32, #tpu.memory_space<vmem>>, %arg18: memref<1x32xf32, #tpu.memory_space<vmem>>, %arg19: memref<1x32xf32, #tpu.memory_space<vmem>>, %arg20: memref<32x64xbf16, #tpu.memory_space<vmem>>, %arg21: memref<1x64xf32, #tpu.memory_space<vmem>>, %arg22: memref<64x32xbf16, #tpu.memory_space<vmem>>, %arg23: memref<1x32xf32, #tpu.memory_space<vmem>>, %arg24: memref<1x32xf32, #tpu.memory_space<vmem>>, %arg25: memref<1x32xf32, #tpu.memory_space<vmem>>, %arg26: memref<2x8x32xf32, #tpu.memory_space<vmem>>) attributes {dimension_semantics = [#tpu.dimension_semantics<parallel>], iteration_bounds = array<i64: 1>, scalar_prefetch = 0 : i64, scratch_operands = 0 : i64, tpu.core_type = #tpu.core_type<tc>, window_params = [{transform_indices = @transform_0, window_bounds = array<i64: 2, 8, 32>}, {transform_indices = @transform_1, window_bounds = array<i64: 2, 8, 32>}, {transform_indices = @transform_2, window_bounds = array<i64: 16, 1>}, {transform_indices = @transform_3, window_bounds = array<i64: 2, 1, 8>}, {transform_indices = @transform_4, window_bounds = array<i64: 2, 1, 8>}, {pipeline_mode = #tpu.pipeline_mode<synchronous>, transform_indices = @transform_5, window_bounds = array<i64: 32, 96>}, {pipeline_mode = #tpu.pipeline_mode<synchronous>, transform_indices = @transform_6, window_bounds = array<i64: 1, 96>}, {pipeline_mode = #tpu.pipeline_mode<synchronous>, transform_indices = @transform_7, window_bounds = array<i64: 32, 32>}, {pipeline_mode = #tpu.pipeline_mode<synchronous>, transform_indices = @transform_8, window_bounds = array<i64: 1, 32>}, {pipeline_mode = #tpu.pipeline_mode<synchronous>, transform_indices = @transform_9, window_bounds = array<i64: 1, 32>}, {pipeline_mode = #tpu.pipeline_mode<synchronous>, transform_indices = @transform_10, window_bounds = array<i64: 1, 32>}, {pipeline_mode = #tpu.pipeline_mode<synchronous>, transform_indices = @transform_11, window_bounds = array<i64: 32, 32>}, {pipeline_mode = #tpu.pipeline_mode<synchronous>, transform_indices = @transform_12, window_bounds = array<i64: 1, 32>}, {pipeline_mode = #tpu.pipeline_mode<synchronous>, transform_indices = @transform_13, window_bounds = array<i64: 32, 64>}, {pipeline_mode = #tpu.pipeline_mode<synchronous>, transform_indices = @transform_14, window_bounds = array<i64: 1, 64>}, {pipeline_mode = #tpu.pipeline_mode<synchronous>, transform_indices = @transform_15, window_bounds = array<i64: 32, 32>}, {pipeline_mode = #tpu.pipeline_mode<synchronous>, transform_indices = @transform_16, window_bounds = array<i64: 1, 32>}, {pipeline_mode = #tpu.pipeline_mode<synchronous>, transform_indices = @transform_17, window_bounds = array<i64: 1, 32>}, {pipeline_mode = #tpu.pipeline_mode<synchronous>, transform_indices = @transform_18, window_bounds = array<i64: 1, 32>}, {pipeline_mode = #tpu.pipeline_mode<synchronous>, transform_indices = @transform_19, window_bounds = array<i64: 32, 64>}, {pipeline_mode = #tpu.pipeline_mode<synchronous>, transform_indices = @transform_20, window_bounds = array<i64: 1, 64>}, {pipeline_mode = #tpu.pipeline_mode<synchronous>, transform_indices = @transform_21, window_bounds = array<i64: 64, 32>}, {pipeline_mode = #tpu.pipeline_mode<synchronous>, transform_indices = @transform_22, window_bounds = array<i64: 1, 32>}, {pipeline_mode = #tpu.pipeline_mode<synchronous>, transform_indices = @transform_23, window_bounds = array<i64: 1, 32>}, {pipeline_mode = #tpu.pipeline_mode<synchronous>, transform_indices = @transform_24, window_bounds = array<i64: 1, 32>}, {transform_indices = @transform_25, window_bounds = array<i64: 2, 8, 32>}]} {
    %c0 = arith.constant 0 : index
    %c0_0 = arith.constant 0 : index
    %c0_1 = arith.constant 0 : index
    %0 = vector.load %arg1[%c0, %c0_0, %c0_1] : memref<2x8x32xf32, #tpu.memory_space<vmem>>, vector<2x8x32xf32>
    %1 = vector.shape_cast %0 : vector<2x8x32xf32> to vector<16x32xf32>
    %c0_2 = arith.constant 0 : index
    %c0_3 = arith.constant 0 : index
    %2 = vector.load %arg3[%c0_2, %c0_3] : memref<16x1xf32, #tpu.memory_space<vmem>>, vector<16x1xf32>
    %c0_4 = arith.constant 0 : index
    %c0_5 = arith.constant 0 : index
    %c0_6 = arith.constant 0 : index
    %3 = vector.load %arg4[%c0_4, %c0_5, %c0_6] : memref<2x1x8xf32, #tpu.memory_space<vmem>>, vector<2x1x8xf32>
    %4 = tpu.iota {dimensions = array<i32: 0>} : vector<8x8xi32>
    %5 = tpu.iota {dimensions = array<i32: 1>} : vector<8x8xi32>
    %cst = arith.constant 5.000000e-01 : f32
    %6 = vector.broadcast %cst : f32 to vector<2x1x8xf32>
    %7 = arith.cmpf ogt, %3, %6 : vector<2x1x8xf32>
    %cst_7 = arith.constant -1.000000e+09 : f32
    %cst_8 = arith.constant 0.000000e+00 : f32
    %8 = vector.broadcast %cst_7 : f32 to vector<2x1x8xf32>
    %9 = vector.broadcast %cst_8 : f32 to vector<2x1x8xf32>
    %10 = arith.select %7, %8, %9 : vector<2x1x8xi1>, vector<2x1x8xf32>
    %11 = arith.cmpi sgt, %5, %4 : vector<8x8xi32>
    %cst_9 = arith.constant -1.000000e+09 : f32
    %cst_10 = arith.constant 0.000000e+00 : f32
    %12 = vector.broadcast %cst_9 : f32 to vector<8x8xf32>
    %13 = vector.broadcast %cst_10 : f32 to vector<8x8xf32>
    %14 = arith.select %11, %12, %13 : vector<8x8xi1>, vector<8x8xf32>
    %15 = vector.shape_cast %14 : vector<8x8xf32> to vector<1x8x8xf32>
    %16 = vector.broadcast %10 : vector<2x1x8xf32> to vector<2x8x8xf32>
    %17 = vector.broadcast %15 : vector<1x8x8xf32> to vector<2x8x8xf32>
    %18 = arith.addf %16, %17 : vector<2x8x8xf32>
    %c0_11 = arith.constant 0 : index
    %c0_12 = arith.constant 0 : index
    %c0_13 = arith.constant 0 : index
    %19 = vector.load %arg5[%c0_11, %c0_12, %c0_13] : memref<2x1x8xf32, #tpu.memory_space<vmem>>, vector<2x1x8xf32>
    %cst_14 = arith.constant 5.000000e-01 : f32
    %20 = vector.broadcast %cst_14 : f32 to vector<2x1x8xf32>
    %21 = arith.cmpf ogt, %19, %20 : vector<2x1x8xf32>
    %cst_15 = arith.constant -1.000000e+09 : f32
    %cst_16 = arith.constant 0.000000e+00 : f32
    %22 = vector.broadcast %cst_15 : f32 to vector<2x1x8xf32>
    %23 = vector.broadcast %cst_16 : f32 to vector<2x1x8xf32>
    %24 = arith.select %21, %22, %23 : vector<2x1x8xi1>, vector<2x1x8xf32>
    %25 = arith.truncf %1 : vector<16x32xf32> to vector<16x32xbf16>
    %c0_17 = arith.constant 0 : index
    %c0_18 = arith.constant 0 : index
    %26 = vector.load %arg6[%c0_17, %c0_18] : memref<32x96xbf16, #tpu.memory_space<vmem>>, vector<32x96xbf16>
    %cst_19 = arith.constant dense<0.000000e+00> : vector<16x96xf32>
    %27 = tpu.matmul %25, %26, %cst_19 {dimension_numbers = #tpu.dot_dimension_numbers<[1], [0], [0], [1], [0, 0, 1, 1], [], []>} : vector<16x32xbf16>, vector<32x96xbf16>, vector<16x96xf32> -> vector<16x96xf32>
    %c0_20 = arith.constant 0 : index
    %c0_21 = arith.constant 0 : index
    %28 = vector.load %arg7[%c0_20, %c0_21] : memref<1x96xf32, #tpu.memory_space<vmem>>, vector<1x96xf32>
    %29 = vector.broadcast %28 : vector<1x96xf32> to vector<16x96xf32>
    %30 = arith.addf %27, %29 : vector<16x96xf32>
    %31 = vector.extract_strided_slice %30 {offsets = [0, 0], sizes = [16, 32], strides = [1, 1]} : vector<16x96xf32> to vector<16x32xf32>
    %cst_22 = arith.constant 2.500000e-01 : f32
    %32 = vector.broadcast %cst_22 : f32 to vector<16x32xf32>
    %33 = arith.mulf %31, %32 : vector<16x32xf32>
    %34 = vector.shape_cast %33 : vector<16x32xf32> to vector<2x8x32xf32>
    %35 = vector.extract_strided_slice %30 {offsets = [0, 32], sizes = [16, 32], strides = [1, 1]} : vector<16x96xf32> to vector<16x32xf32>
    %36 = vector.shape_cast %35 : vector<16x32xf32> to vector<2x8x32xf32>
    %37 = vector.extract_strided_slice %30 {offsets = [0, 64], sizes = [16, 32], strides = [1, 1]} : vector<16x96xf32> to vector<16x32xf32>
    %38 = vector.shape_cast %37 : vector<16x32xf32> to vector<2x8x32xf32>
    %c0_23 = arith.constant 0 : index
    %c0_24 = arith.constant 0 : index
    %39 = vector.load %arg9[%c0_23, %c0_24] : memref<1x32xf32, #tpu.memory_space<vmem>>, vector<1x32xf32>
    %cst_25 = arith.constant 0.000000e+00 : f32
    %40 = vector.broadcast %cst_25 : f32 to vector<16x32xf32>
    %41 = vector.extract_strided_slice %34 {offsets = [0, 0, 0], sizes = [2, 8, 16], strides = [1, 1, 1]} : vector<2x8x32xf32> to vector<2x8x16xf32>
    %42 = vector.extract_strided_slice %36 {offsets = [0, 0, 0], sizes = [2, 8, 16], strides = [1, 1, 1]} : vector<2x8x32xf32> to vector<2x8x16xf32>
    %43 = vector.extract_strided_slice %38 {offsets = [0, 0, 0], sizes = [2, 8, 16], strides = [1, 1, 1]} : vector<2x8x32xf32> to vector<2x8x16xf32>
    %44 = arith.truncf %41 : vector<2x8x16xf32> to vector<2x8x16xbf16>
    %45 = arith.truncf %42 : vector<2x8x16xf32> to vector<2x8x16xbf16>
    "tpu.trace_start"() <{level = 10 : i32, message = "bqd,bkd->bqk"}> : () -> ()
    %cst_26 = arith.constant dense<0.000000e+00> : vector<2x8x8xf32>
    %46 = tpu.matmul %44, %45, %cst_26 {dimension_numbers = #tpu.dot_dimension_numbers<[2], [2], [1], [1], [0, 0, 0, 1, 1, 1], [0], [0]>} : vector<2x8x16xbf16>, vector<2x8x16xbf16>, vector<2x8x8xf32> -> vector<2x8x8xf32>
    "tpu.trace_stop"() : () -> ()
    %47 = arith.addf %46, %18 : vector<2x8x8xf32>
    %cst_27 = arith.constant dense<0xFF800000> : vector<2x8xf32>
    %48 = vector.multi_reduction <maximumf>, %47, %cst_27 [2] : vector<2x8x8xf32> to vector<2x8xf32>
    %49 = vector.shape_cast %48 : vector<2x8xf32> to vector<2x8x1xf32>
    %50 = vector.broadcast %49 : vector<2x8x1xf32> to vector<2x8x8xf32>
    %51 = arith.subf %47, %50 : vector<2x8x8xf32>
    %52 = math.exp %51 : vector<2x8x8xf32>
    %cst_28 = arith.constant dense<0.000000e+00> : vector<2x8xf32>
    %53 = vector.multi_reduction <add>, %52, %cst_28 [2] : vector<2x8x8xf32> to vector<2x8xf32>
    %54 = vector.shape_cast %53 : vector<2x8xf32> to vector<2x8x1xf32>
    %55 = tpu.reciprocal %54 {approx = true} : vector<2x8x1xf32> -> vector<2x8x1xf32>
    %56 = vector.broadcast %55 : vector<2x8x1xf32> to vector<2x8x8xf32>
    %57 = arith.mulf %52, %56 : vector<2x8x8xf32>
    %58 = arith.truncf %57 : vector<2x8x8xf32> to vector<2x8x8xbf16>
    %59 = arith.truncf %43 : vector<2x8x16xf32> to vector<2x8x16xbf16>
    "tpu.trace_start"() <{level = 10 : i32, message = "bqk,bkd->bqd"}> : () -> ()
    %cst_29 = arith.constant dense<0.000000e+00> : vector<2x8x16xf32>
    %60 = tpu.matmul %58, %59, %cst_29 {dimension_numbers = #tpu.dot_dimension_numbers<[2], [1], [1], [2], [0, 0, 0, 1, 1, 2], [0], [0]>} : vector<2x8x8xbf16>, vector<2x8x16xbf16>, vector<2x8x16xf32> -> vector<2x8x16xf32>
    "tpu.trace_stop"() : () -> ()
    %61 = vector.shape_cast %60 : vector<2x8x16xf32> to vector<16x16xf32>
    %62 = arith.truncf %61 : vector<16x16xf32> to vector<16x16xbf16>
    %c0_30 = arith.constant 0 : index
    %c0_31 = arith.constant 0 : index
    %63 = vector.load %arg8[%c0_30, %c0_31] : memref<32x32xbf16, #tpu.memory_space<vmem>>, vector<16x32xbf16>
    %cst_32 = arith.constant dense<0.000000e+00> : vector<16x32xf32>
    %64 = tpu.matmul %62, %63, %cst_32 {dimension_numbers = #tpu.dot_dimension_numbers<[1], [0], [0], [1], [0, 0, 1, 1], [], []>} : vector<16x16xbf16>, vector<16x32xbf16>, vector<16x32xf32> -> vector<16x32xf32>
    %65 = arith.addf %40, %64 : vector<16x32xf32>
    %66 = vector.extract_strided_slice %34 {offsets = [0, 0, 16], sizes = [2, 8, 16], strides = [1, 1, 1]} : vector<2x8x32xf32> to vector<2x8x16xf32>
    %67 = vector.extract_strided_slice %36 {offsets = [0, 0, 16], sizes = [2, 8, 16], strides = [1, 1, 1]} : vector<2x8x32xf32> to vector<2x8x16xf32>
    %68 = vector.extract_strided_slice %38 {offsets = [0, 0, 16], sizes = [2, 8, 16], strides = [1, 1, 1]} : vector<2x8x32xf32> to vector<2x8x16xf32>
    %69 = arith.truncf %66 : vector<2x8x16xf32> to vector<2x8x16xbf16>
    %70 = arith.truncf %67 : vector<2x8x16xf32> to vector<2x8x16xbf16>
    "tpu.trace_start"() <{level = 10 : i32, message = "bqd,bkd->bqk"}> : () -> ()
    %cst_33 = arith.constant dense<0.000000e+00> : vector<2x8x8xf32>
    %71 = tpu.matmul %69, %70, %cst_33 {dimension_numbers = #tpu.dot_dimension_numbers<[2], [2], [1], [1], [0, 0, 0, 1, 1, 1], [0], [0]>} : vector<2x8x16xbf16>, vector<2x8x16xbf16>, vector<2x8x8xf32> -> vector<2x8x8xf32>
    "tpu.trace_stop"() : () -> ()
    %72 = arith.addf %71, %18 : vector<2x8x8xf32>
    %cst_34 = arith.constant dense<0xFF800000> : vector<2x8xf32>
    %73 = vector.multi_reduction <maximumf>, %72, %cst_34 [2] : vector<2x8x8xf32> to vector<2x8xf32>
    %74 = vector.shape_cast %73 : vector<2x8xf32> to vector<2x8x1xf32>
    %75 = vector.broadcast %74 : vector<2x8x1xf32> to vector<2x8x8xf32>
    %76 = arith.subf %72, %75 : vector<2x8x8xf32>
    %77 = math.exp %76 : vector<2x8x8xf32>
    %cst_35 = arith.constant dense<0.000000e+00> : vector<2x8xf32>
    %78 = vector.multi_reduction <add>, %77, %cst_35 [2] : vector<2x8x8xf32> to vector<2x8xf32>
    %79 = vector.shape_cast %78 : vector<2x8xf32> to vector<2x8x1xf32>
    %80 = tpu.reciprocal %79 {approx = true} : vector<2x8x1xf32> -> vector<2x8x1xf32>
    %81 = vector.broadcast %80 : vector<2x8x1xf32> to vector<2x8x8xf32>
    %82 = arith.mulf %77, %81 : vector<2x8x8xf32>
    %83 = arith.truncf %82 : vector<2x8x8xf32> to vector<2x8x8xbf16>
    %84 = arith.truncf %68 : vector<2x8x16xf32> to vector<2x8x16xbf16>
    "tpu.trace_start"() <{level = 10 : i32, message = "bqk,bkd->bqd"}> : () -> ()
    %cst_36 = arith.constant dense<0.000000e+00> : vector<2x8x16xf32>
    %85 = tpu.matmul %83, %84, %cst_36 {dimension_numbers = #tpu.dot_dimension_numbers<[2], [1], [1], [2], [0, 0, 0, 1, 1, 2], [0], [0]>} : vector<2x8x8xbf16>, vector<2x8x16xbf16>, vector<2x8x16xf32> -> vector<2x8x16xf32>
    "tpu.trace_stop"() : () -> ()
    %86 = vector.shape_cast %85 : vector<2x8x16xf32> to vector<16x16xf32>
    %87 = arith.truncf %86 : vector<16x16xf32> to vector<16x16xbf16>
    %c16 = arith.constant 16 : index
    %c0_37 = arith.constant 0 : index
    %88 = vector.load %arg8[%c16, %c0_37] : memref<32x32xbf16, #tpu.memory_space<vmem>>, vector<16x32xbf16>
    %cst_38 = arith.constant dense<0.000000e+00> : vector<16x32xf32>
    %89 = tpu.matmul %87, %88, %cst_38 {dimension_numbers = #tpu.dot_dimension_numbers<[1], [0], [0], [1], [0, 0, 1, 1], [], []>} : vector<16x16xbf16>, vector<16x32xbf16>, vector<16x32xf32> -> vector<16x32xf32>
    %90 = arith.addf %65, %89 : vector<16x32xf32>
    %91 = vector.broadcast %39 : vector<1x32xf32> to vector<16x32xf32>
    %92 = arith.addf %90, %91 : vector<16x32xf32>
    %93 = arith.addf %92, %1 : vector<16x32xf32>
    %cst_39 = arith.constant dense<0.000000e+00> : vector<16xf32>
    %94 = vector.multi_reduction <add>, %93, %cst_39 [1] : vector<16x32xf32> to vector<16xf32>
    %95 = vector.shape_cast %94 : vector<16xf32> to vector<16x1xf32>
    %cst_40 = arith.constant 3.200000e+01 : f32
    %96 = vector.broadcast %cst_40 : f32 to vector<16x1xf32>
    %97 = arith.divf %95, %96 : vector<16x1xf32>
    %98 = vector.broadcast %97 : vector<16x1xf32> to vector<16x32xf32>
    %99 = arith.subf %93, %98 : vector<16x32xf32>
    %100 = arith.mulf %99, %99 : vector<16x32xf32>
    %cst_41 = arith.constant dense<0.000000e+00> : vector<16xf32>
    %101 = vector.multi_reduction <add>, %100, %cst_41 [1] : vector<16x32xf32> to vector<16xf32>
    %102 = vector.shape_cast %101 : vector<16xf32> to vector<16x1xf32>
    %cst_42 = arith.constant 3.200000e+01 : f32
    %103 = vector.broadcast %cst_42 : f32 to vector<16x1xf32>
    %104 = arith.divf %102, %103 : vector<16x1xf32>
    %105 = vector.broadcast %97 : vector<16x1xf32> to vector<16x32xf32>
    %106 = arith.subf %93, %105 : vector<16x32xf32>
    %cst_43 = arith.constant 9.99999974E-6 : f32
    %107 = vector.broadcast %cst_43 : f32 to vector<16x1xf32>
    %108 = arith.addf %104, %107 : vector<16x1xf32>
    %109 = math.rsqrt %108 : vector<16x1xf32>
    %110 = vector.broadcast %109 : vector<16x1xf32> to vector<16x32xf32>
    %111 = arith.mulf %106, %110 : vector<16x32xf32>
    %c0_44 = arith.constant 0 : index
    %c0_45 = arith.constant 0 : index
    %112 = vector.load %arg10[%c0_44, %c0_45] : memref<1x32xf32, #tpu.memory_space<vmem>>, vector<1x32xf32>
    %113 = vector.broadcast %112 : vector<1x32xf32> to vector<16x32xf32>
    %114 = arith.mulf %111, %113 : vector<16x32xf32>
    %c0_46 = arith.constant 0 : index
    %c0_47 = arith.constant 0 : index
    %115 = vector.load %arg11[%c0_46, %c0_47] : memref<1x32xf32, #tpu.memory_space<vmem>>, vector<1x32xf32>
    %116 = vector.broadcast %115 : vector<1x32xf32> to vector<16x32xf32>
    %117 = arith.addf %114, %116 : vector<16x32xf32>
    %118 = vector.broadcast %2 : vector<16x1xf32> to vector<16x32xf32>
    %119 = arith.mulf %117, %118 : vector<16x32xf32>
    %c0_48 = arith.constant 0 : index
    %c0_49 = arith.constant 0 : index
    %c0_50 = arith.constant 0 : index
    %120 = vector.load %arg2[%c0_48, %c0_49, %c0_50] : memref<2x8x32xf32, #tpu.memory_space<vmem>>, vector<2x8x32xf32>
    %121 = vector.shape_cast %120 : vector<2x8x32xf32> to vector<16x32xf32>
    %122 = arith.truncf %119 : vector<16x32xf32> to vector<16x32xbf16>
    %c0_51 = arith.constant 0 : index
    %c0_52 = arith.constant 0 : index
    %123 = vector.load %arg12[%c0_51, %c0_52] : memref<32x32xbf16, #tpu.memory_space<vmem>>, vector<32x32xbf16>
    %cst_53 = arith.constant dense<0.000000e+00> : vector<16x32xf32>
    %124 = tpu.matmul %122, %123, %cst_53 {dimension_numbers = #tpu.dot_dimension_numbers<[1], [0], [0], [1], [0, 0, 1, 1], [], []>} : vector<16x32xbf16>, vector<32x32xbf16>, vector<16x32xf32> -> vector<16x32xf32>
    %c0_54 = arith.constant 0 : index
    %c0_55 = arith.constant 0 : index
    %125 = vector.load %arg13[%c0_54, %c0_55] : memref<1x32xf32, #tpu.memory_space<vmem>>, vector<1x32xf32>
    %126 = vector.broadcast %125 : vector<1x32xf32> to vector<16x32xf32>
    %127 = arith.addf %124, %126 : vector<16x32xf32>
    %cst_56 = arith.constant 2.500000e-01 : f32
    %128 = vector.broadcast %cst_56 : f32 to vector<16x32xf32>
    %129 = arith.mulf %127, %128 : vector<16x32xf32>
    %130 = arith.truncf %121 : vector<16x32xf32> to vector<16x32xbf16>
    %c0_57 = arith.constant 0 : index
    %c0_58 = arith.constant 0 : index
    %131 = vector.load %arg14[%c0_57, %c0_58] : memref<32x64xbf16, #tpu.memory_space<vmem>>, vector<32x64xbf16>
    %cst_59 = arith.constant dense<0.000000e+00> : vector<16x64xf32>
    %132 = tpu.matmul %130, %131, %cst_59 {dimension_numbers = #tpu.dot_dimension_numbers<[1], [0], [0], [1], [0, 0, 1, 1], [], []>} : vector<16x32xbf16>, vector<32x64xbf16>, vector<16x64xf32> -> vector<16x64xf32>
    %c0_60 = arith.constant 0 : index
    %c0_61 = arith.constant 0 : index
    %133 = vector.load %arg15[%c0_60, %c0_61] : memref<1x64xf32, #tpu.memory_space<vmem>>, vector<1x64xf32>
    %134 = vector.broadcast %133 : vector<1x64xf32> to vector<16x64xf32>
    %135 = arith.addf %132, %134 : vector<16x64xf32>
    %136 = vector.extract_strided_slice %135 {offsets = [0, 0], sizes = [16, 32], strides = [1, 1]} : vector<16x64xf32> to vector<16x32xf32>
    %137 = vector.shape_cast %136 : vector<16x32xf32> to vector<2x8x32xf32>
    %138 = vector.extract_strided_slice %135 {offsets = [0, 32], sizes = [16, 32], strides = [1, 1]} : vector<16x64xf32> to vector<16x32xf32>
    %139 = vector.shape_cast %138 : vector<16x32xf32> to vector<2x8x32xf32>
    %140 = vector.shape_cast %129 : vector<16x32xf32> to vector<2x8x32xf32>
    %c0_62 = arith.constant 0 : index
    %c0_63 = arith.constant 0 : index
    %141 = vector.load %arg17[%c0_62, %c0_63] : memref<1x32xf32, #tpu.memory_space<vmem>>, vector<1x32xf32>
    %cst_64 = arith.constant 0.000000e+00 : f32
    %142 = vector.broadcast %cst_64 : f32 to vector<16x32xf32>
    %143 = vector.extract_strided_slice %140 {offsets = [0, 0, 0], sizes = [2, 8, 16], strides = [1, 1, 1]} : vector<2x8x32xf32> to vector<2x8x16xf32>
    %144 = vector.extract_strided_slice %137 {offsets = [0, 0, 0], sizes = [2, 8, 16], strides = [1, 1, 1]} : vector<2x8x32xf32> to vector<2x8x16xf32>
    %145 = vector.extract_strided_slice %139 {offsets = [0, 0, 0], sizes = [2, 8, 16], strides = [1, 1, 1]} : vector<2x8x32xf32> to vector<2x8x16xf32>
    %146 = arith.truncf %143 : vector<2x8x16xf32> to vector<2x8x16xbf16>
    %147 = arith.truncf %144 : vector<2x8x16xf32> to vector<2x8x16xbf16>
    "tpu.trace_start"() <{level = 10 : i32, message = "bqd,bkd->bqk"}> : () -> ()
    %cst_65 = arith.constant dense<0.000000e+00> : vector<2x8x8xf32>
    %148 = tpu.matmul %146, %147, %cst_65 {dimension_numbers = #tpu.dot_dimension_numbers<[2], [2], [1], [1], [0, 0, 0, 1, 1, 1], [0], [0]>} : vector<2x8x16xbf16>, vector<2x8x16xbf16>, vector<2x8x8xf32> -> vector<2x8x8xf32>
    "tpu.trace_stop"() : () -> ()
    %149 = vector.broadcast %24 : vector<2x1x8xf32> to vector<2x8x8xf32>
    %150 = arith.addf %148, %149 : vector<2x8x8xf32>
    %cst_66 = arith.constant dense<0xFF800000> : vector<2x8xf32>
    %151 = vector.multi_reduction <maximumf>, %150, %cst_66 [2] : vector<2x8x8xf32> to vector<2x8xf32>
    %152 = vector.shape_cast %151 : vector<2x8xf32> to vector<2x8x1xf32>
    %153 = vector.broadcast %152 : vector<2x8x1xf32> to vector<2x8x8xf32>
    %154 = arith.subf %150, %153 : vector<2x8x8xf32>
    %155 = math.exp %154 : vector<2x8x8xf32>
    %cst_67 = arith.constant dense<0.000000e+00> : vector<2x8xf32>
    %156 = vector.multi_reduction <add>, %155, %cst_67 [2] : vector<2x8x8xf32> to vector<2x8xf32>
    %157 = vector.shape_cast %156 : vector<2x8xf32> to vector<2x8x1xf32>
    %158 = tpu.reciprocal %157 {approx = true} : vector<2x8x1xf32> -> vector<2x8x1xf32>
    %159 = vector.broadcast %158 : vector<2x8x1xf32> to vector<2x8x8xf32>
    %160 = arith.mulf %155, %159 : vector<2x8x8xf32>
    %161 = arith.truncf %160 : vector<2x8x8xf32> to vector<2x8x8xbf16>
    %162 = arith.truncf %145 : vector<2x8x16xf32> to vector<2x8x16xbf16>
    "tpu.trace_start"() <{level = 10 : i32, message = "bqk,bkd->bqd"}> : () -> ()
    %cst_68 = arith.constant dense<0.000000e+00> : vector<2x8x16xf32>
    %163 = tpu.matmul %161, %162, %cst_68 {dimension_numbers = #tpu.dot_dimension_numbers<[2], [1], [1], [2], [0, 0, 0, 1, 1, 2], [0], [0]>} : vector<2x8x8xbf16>, vector<2x8x16xbf16>, vector<2x8x16xf32> -> vector<2x8x16xf32>
    "tpu.trace_stop"() : () -> ()
    %164 = vector.shape_cast %163 : vector<2x8x16xf32> to vector<16x16xf32>
    %165 = arith.truncf %164 : vector<16x16xf32> to vector<16x16xbf16>
    %c0_69 = arith.constant 0 : index
    %c0_70 = arith.constant 0 : index
    %166 = vector.load %arg16[%c0_69, %c0_70] : memref<32x32xbf16, #tpu.memory_space<vmem>>, vector<16x32xbf16>
    %cst_71 = arith.constant dense<0.000000e+00> : vector<16x32xf32>
    %167 = tpu.matmul %165, %166, %cst_71 {dimension_numbers = #tpu.dot_dimension_numbers<[1], [0], [0], [1], [0, 0, 1, 1], [], []>} : vector<16x16xbf16>, vector<16x32xbf16>, vector<16x32xf32> -> vector<16x32xf32>
    %168 = arith.addf %142, %167 : vector<16x32xf32>
    %169 = vector.extract_strided_slice %140 {offsets = [0, 0, 16], sizes = [2, 8, 16], strides = [1, 1, 1]} : vector<2x8x32xf32> to vector<2x8x16xf32>
    %170 = vector.extract_strided_slice %137 {offsets = [0, 0, 16], sizes = [2, 8, 16], strides = [1, 1, 1]} : vector<2x8x32xf32> to vector<2x8x16xf32>
    %171 = vector.extract_strided_slice %139 {offsets = [0, 0, 16], sizes = [2, 8, 16], strides = [1, 1, 1]} : vector<2x8x32xf32> to vector<2x8x16xf32>
    %172 = arith.truncf %169 : vector<2x8x16xf32> to vector<2x8x16xbf16>
    %173 = arith.truncf %170 : vector<2x8x16xf32> to vector<2x8x16xbf16>
    "tpu.trace_start"() <{level = 10 : i32, message = "bqd,bkd->bqk"}> : () -> ()
    %cst_72 = arith.constant dense<0.000000e+00> : vector<2x8x8xf32>
    %174 = tpu.matmul %172, %173, %cst_72 {dimension_numbers = #tpu.dot_dimension_numbers<[2], [2], [1], [1], [0, 0, 0, 1, 1, 1], [0], [0]>} : vector<2x8x16xbf16>, vector<2x8x16xbf16>, vector<2x8x8xf32> -> vector<2x8x8xf32>
    "tpu.trace_stop"() : () -> ()
    %175 = vector.broadcast %24 : vector<2x1x8xf32> to vector<2x8x8xf32>
    %176 = arith.addf %174, %175 : vector<2x8x8xf32>
    %cst_73 = arith.constant dense<0xFF800000> : vector<2x8xf32>
    %177 = vector.multi_reduction <maximumf>, %176, %cst_73 [2] : vector<2x8x8xf32> to vector<2x8xf32>
    %178 = vector.shape_cast %177 : vector<2x8xf32> to vector<2x8x1xf32>
    %179 = vector.broadcast %178 : vector<2x8x1xf32> to vector<2x8x8xf32>
    %180 = arith.subf %176, %179 : vector<2x8x8xf32>
    %181 = math.exp %180 : vector<2x8x8xf32>
    %cst_74 = arith.constant dense<0.000000e+00> : vector<2x8xf32>
    %182 = vector.multi_reduction <add>, %181, %cst_74 [2] : vector<2x8x8xf32> to vector<2x8xf32>
    %183 = vector.shape_cast %182 : vector<2x8xf32> to vector<2x8x1xf32>
    %184 = tpu.reciprocal %183 {approx = true} : vector<2x8x1xf32> -> vector<2x8x1xf32>
    %185 = vector.broadcast %184 : vector<2x8x1xf32> to vector<2x8x8xf32>
    %186 = arith.mulf %181, %185 : vector<2x8x8xf32>
    %187 = arith.truncf %186 : vector<2x8x8xf32> to vector<2x8x8xbf16>
    %188 = arith.truncf %171 : vector<2x8x16xf32> to vector<2x8x16xbf16>
    "tpu.trace_start"() <{level = 10 : i32, message = "bqk,bkd->bqd"}> : () -> ()
    %cst_75 = arith.constant dense<0.000000e+00> : vector<2x8x16xf32>
    %189 = tpu.matmul %187, %188, %cst_75 {dimension_numbers = #tpu.dot_dimension_numbers<[2], [1], [1], [2], [0, 0, 0, 1, 1, 2], [0], [0]>} : vector<2x8x8xbf16>, vector<2x8x16xbf16>, vector<2x8x16xf32> -> vector<2x8x16xf32>
    "tpu.trace_stop"() : () -> ()
    %190 = vector.shape_cast %189 : vector<2x8x16xf32> to vector<16x16xf32>
    %191 = arith.truncf %190 : vector<16x16xf32> to vector<16x16xbf16>
    %c16_76 = arith.constant 16 : index
    %c0_77 = arith.constant 0 : index
    %192 = vector.load %arg16[%c16_76, %c0_77] : memref<32x32xbf16, #tpu.memory_space<vmem>>, vector<16x32xbf16>
    %cst_78 = arith.constant dense<0.000000e+00> : vector<16x32xf32>
    %193 = tpu.matmul %191, %192, %cst_78 {dimension_numbers = #tpu.dot_dimension_numbers<[1], [0], [0], [1], [0, 0, 1, 1], [], []>} : vector<16x16xbf16>, vector<16x32xbf16>, vector<16x32xf32> -> vector<16x32xf32>
    %194 = arith.addf %168, %193 : vector<16x32xf32>
    %195 = vector.broadcast %141 : vector<1x32xf32> to vector<16x32xf32>
    %196 = arith.addf %194, %195 : vector<16x32xf32>
    %197 = arith.addf %196, %119 : vector<16x32xf32>
    %cst_79 = arith.constant dense<0.000000e+00> : vector<16xf32>
    %198 = vector.multi_reduction <add>, %197, %cst_79 [1] : vector<16x32xf32> to vector<16xf32>
    %199 = vector.shape_cast %198 : vector<16xf32> to vector<16x1xf32>
    %cst_80 = arith.constant 3.200000e+01 : f32
    %200 = vector.broadcast %cst_80 : f32 to vector<16x1xf32>
    %201 = arith.divf %199, %200 : vector<16x1xf32>
    %202 = vector.broadcast %201 : vector<16x1xf32> to vector<16x32xf32>
    %203 = arith.subf %197, %202 : vector<16x32xf32>
    %204 = arith.mulf %203, %203 : vector<16x32xf32>
    %cst_81 = arith.constant dense<0.000000e+00> : vector<16xf32>
    %205 = vector.multi_reduction <add>, %204, %cst_81 [1] : vector<16x32xf32> to vector<16xf32>
    %206 = vector.shape_cast %205 : vector<16xf32> to vector<16x1xf32>
    %cst_82 = arith.constant 3.200000e+01 : f32
    %207 = vector.broadcast %cst_82 : f32 to vector<16x1xf32>
    %208 = arith.divf %206, %207 : vector<16x1xf32>
    %209 = vector.broadcast %201 : vector<16x1xf32> to vector<16x32xf32>
    %210 = arith.subf %197, %209 : vector<16x32xf32>
    %cst_83 = arith.constant 9.99999974E-6 : f32
    %211 = vector.broadcast %cst_83 : f32 to vector<16x1xf32>
    %212 = arith.addf %208, %211 : vector<16x1xf32>
    %213 = math.rsqrt %212 : vector<16x1xf32>
    %214 = vector.broadcast %213 : vector<16x1xf32> to vector<16x32xf32>
    %215 = arith.mulf %210, %214 : vector<16x32xf32>
    %c0_84 = arith.constant 0 : index
    %c0_85 = arith.constant 0 : index
    %216 = vector.load %arg18[%c0_84, %c0_85] : memref<1x32xf32, #tpu.memory_space<vmem>>, vector<1x32xf32>
    %217 = vector.broadcast %216 : vector<1x32xf32> to vector<16x32xf32>
    %218 = arith.mulf %215, %217 : vector<16x32xf32>
    %c0_86 = arith.constant 0 : index
    %c0_87 = arith.constant 0 : index
    %219 = vector.load %arg19[%c0_86, %c0_87] : memref<1x32xf32, #tpu.memory_space<vmem>>, vector<1x32xf32>
    %220 = vector.broadcast %219 : vector<1x32xf32> to vector<16x32xf32>
    %221 = arith.addf %218, %220 : vector<16x32xf32>
    %222 = vector.broadcast %2 : vector<16x1xf32> to vector<16x32xf32>
    %223 = arith.mulf %221, %222 : vector<16x32xf32>
    %224 = arith.truncf %223 : vector<16x32xf32> to vector<16x32xbf16>
    %c0_88 = arith.constant 0 : index
    %c0_89 = arith.constant 0 : index
    %225 = vector.load %arg20[%c0_88, %c0_89] : memref<32x64xbf16, #tpu.memory_space<vmem>>, vector<32x64xbf16>
    %cst_90 = arith.constant dense<0.000000e+00> : vector<16x64xf32>
    %226 = tpu.matmul %224, %225, %cst_90 {dimension_numbers = #tpu.dot_dimension_numbers<[1], [0], [0], [1], [0, 0, 1, 1], [], []>} : vector<16x32xbf16>, vector<32x64xbf16>, vector<16x64xf32> -> vector<16x64xf32>
    %c0_91 = arith.constant 0 : index
    %c0_92 = arith.constant 0 : index
    %227 = vector.load %arg21[%c0_91, %c0_92] : memref<1x64xf32, #tpu.memory_space<vmem>>, vector<1x64xf32>
    %228 = vector.broadcast %227 : vector<1x64xf32> to vector<16x64xf32>
    %229 = arith.addf %226, %228 : vector<16x64xf32>
    %cst_93 = arith.constant 0.000000e+00 : f32
    %230 = vector.broadcast %cst_93 : f32 to vector<16x64xf32>
    %231 = arith.maximumf %229, %230 : vector<16x64xf32>
    %232 = arith.truncf %231 : vector<16x64xf32> to vector<16x64xbf16>
    %c0_94 = arith.constant 0 : index
    %c0_95 = arith.constant 0 : index
    %233 = vector.load %arg22[%c0_94, %c0_95] : memref<64x32xbf16, #tpu.memory_space<vmem>>, vector<64x32xbf16>
    %cst_96 = arith.constant dense<0.000000e+00> : vector<16x32xf32>
    %234 = tpu.matmul %232, %233, %cst_96 {dimension_numbers = #tpu.dot_dimension_numbers<[1], [0], [0], [1], [0, 0, 1, 1], [], []>} : vector<16x64xbf16>, vector<64x32xbf16>, vector<16x32xf32> -> vector<16x32xf32>
    %c0_97 = arith.constant 0 : index
    %c0_98 = arith.constant 0 : index
    %235 = vector.load %arg23[%c0_97, %c0_98] : memref<1x32xf32, #tpu.memory_space<vmem>>, vector<1x32xf32>
    %236 = vector.broadcast %235 : vector<1x32xf32> to vector<16x32xf32>
    %237 = arith.addf %234, %236 : vector<16x32xf32>
    %238 = arith.addf %237, %223 : vector<16x32xf32>
    %cst_99 = arith.constant dense<0.000000e+00> : vector<16xf32>
    %239 = vector.multi_reduction <add>, %238, %cst_99 [1] : vector<16x32xf32> to vector<16xf32>
    %240 = vector.shape_cast %239 : vector<16xf32> to vector<16x1xf32>
    %cst_100 = arith.constant 3.200000e+01 : f32
    %241 = vector.broadcast %cst_100 : f32 to vector<16x1xf32>
    %242 = arith.divf %240, %241 : vector<16x1xf32>
    %243 = vector.broadcast %242 : vector<16x1xf32> to vector<16x32xf32>
    %244 = arith.subf %238, %243 : vector<16x32xf32>
    %245 = arith.mulf %244, %244 : vector<16x32xf32>
    %cst_101 = arith.constant dense<0.000000e+00> : vector<16xf32>
    %246 = vector.multi_reduction <add>, %245, %cst_101 [1] : vector<16x32xf32> to vector<16xf32>
    %247 = vector.shape_cast %246 : vector<16xf32> to vector<16x1xf32>
    %cst_102 = arith.constant 3.200000e+01 : f32
    %248 = vector.broadcast %cst_102 : f32 to vector<16x1xf32>
    %249 = arith.divf %247, %248 : vector<16x1xf32>
    %250 = vector.broadcast %242 : vector<16x1xf32> to vector<16x32xf32>
    %251 = arith.subf %238, %250 : vector<16x32xf32>
    %cst_103 = arith.constant 9.99999974E-6 : f32
    %252 = vector.broadcast %cst_103 : f32 to vector<16x1xf32>
    %253 = arith.addf %249, %252 : vector<16x1xf32>
    %254 = math.rsqrt %253 : vector<16x1xf32>
    %255 = vector.broadcast %254 : vector<16x1xf32> to vector<16x32xf32>
    %256 = arith.mulf %251, %255 : vector<16x32xf32>
    %c0_104 = arith.constant 0 : index
    %c0_105 = arith.constant 0 : index
    %257 = vector.load %arg24[%c0_104, %c0_105] : memref<1x32xf32, #tpu.memory_space<vmem>>, vector<1x32xf32>
    %258 = vector.broadcast %257 : vector<1x32xf32> to vector<16x32xf32>
    %259 = arith.mulf %256, %258 : vector<16x32xf32>
    %c0_106 = arith.constant 0 : index
    %c0_107 = arith.constant 0 : index
    %260 = vector.load %arg25[%c0_106, %c0_107] : memref<1x32xf32, #tpu.memory_space<vmem>>, vector<1x32xf32>
    %261 = vector.broadcast %260 : vector<1x32xf32> to vector<16x32xf32>
    %262 = arith.addf %259, %261 : vector<16x32xf32>
    %263 = vector.broadcast %2 : vector<16x1xf32> to vector<16x32xf32>
    %264 = arith.mulf %262, %263 : vector<16x32xf32>
    %265 = vector.shape_cast %264 : vector<16x32xf32> to vector<2x8x32xf32>
    %c0_108 = arith.constant 0 : index
    %c0_109 = arith.constant 0 : index
    %c0_110 = arith.constant 0 : index
    %266 = vector.load %arg26[%c0_108, %c0_109, %c0_110] : memref<2x8x32xf32, #tpu.memory_space<vmem>>, vector<2x8x32xf32>
    tpu.vector_store %arg26[%c0_108, %c0_109, %c0_110], %265 {strides = array<i32>} : memref<2x8x32xf32, #tpu.memory_space<vmem>>, vector<2x8x32xf32>,
    return
  }
  func.func @transform_0(%arg0: i32) -> (i32, i32, i32) {
    %c0_i32 = arith.constant 0 : i32
    %c0_i32_0 = arith.constant 0 : i32
    %c0_i32_1 = arith.constant 0 : i32
    return %arg0, %c0_i32, %c0_i32_0 : i32, i32, i32
  }
  func.func @transform_1(%arg0: i32) -> (i32, i32, i32) {
    %c0_i32 = arith.constant 0 : i32
    %c0_i32_0 = arith.constant 0 : i32
    %c0_i32_1 = arith.constant 0 : i32
    return %arg0, %c0_i32, %c0_i32_0 : i32, i32, i32
  }
  func.func @transform_2(%arg0: i32) -> (i32, i32) {
    %c0_i32 = arith.constant 0 : i32
    %c0_i32_0 = arith.constant 0 : i32
    return %arg0, %c0_i32 : i32, i32
  }
  func.func @transform_3(%arg0: i32) -> (i32, i32, i32) {
    %c0_i32 = arith.constant 0 : i32
    %c0_i32_0 = arith.constant 0 : i32
    %c0_i32_1 = arith.constant 0 : i32
    return %arg0, %c0_i32, %c0_i32_0 : i32, i32, i32
  }
  func.func @transform_4(%arg0: i32) -> (i32, i32, i32) {
    %c0_i32 = arith.constant 0 : i32
    %c0_i32_0 = arith.constant 0 : i32
    %c0_i32_1 = arith.constant 0 : i32
    return %arg0, %c0_i32, %c0_i32_0 : i32, i32, i32
  }
  func.func @transform_5(%arg0: i32) -> (i32, i32) {
    %c0_i32 = arith.constant 0 : i32
    %c0_i32_0 = arith.constant 0 : i32
    %c0_i32_1 = arith.constant 0 : i32
    return %c0_i32, %c0_i32_0 : i32, i32
  }
  func.func @transform_6(%arg0: i32) -> (i32, i32) {
    %c0_i32 = arith.constant 0 : i32
    %c0_i32_0 = arith.constant 0 : i32
    %c0_i32_1 = arith.constant 0 : i32
    return %c0_i32, %c0_i32_0 : i32, i32
  }
  func.func @transform_7(%arg0: i32) -> (i32, i32) {
    %c0_i32 = arith.constant 0 : i32
    %c0_i32_0 = arith.constant 0 : i32
    %c0_i32_1 = arith.constant 0 : i32
    return %c0_i32, %c0_i32_0 : i32, i32
  }
  func.func @transform_8(%arg0: i32) -> (i32, i32) {
    %c0_i32 = arith.constant 0 : i32
    %c0_i32_0 = arith.constant 0 : i32
    %c0_i32_1 = arith.constant 0 : i32
    return %c0_i32, %c0_i32_0 : i32, i32
  }
  func.func @transform_9(%arg0: i32) -> (i32, i32) {
    %c0_i32 = arith.constant 0 : i32
    %c0_i32_0 = arith.constant 0 : i32
    %c0_i32_1 = arith.constant 0 : i32
    return %c0_i32, %c0_i32_0 : i32, i32
  }
  func.func @transform_10(%arg0: i32) -> (i32, i32) {
    %c0_i32 = arith.constant 0 : i32
    %c0_i32_0 = arith.constant 0 : i32
    %c0_i32_1 = arith.constant 0 : i32
    return %c0_i32, %c0_i32_0 : i32, i32
  }
  func.func @transform_11(%arg0: i32) -> (i32, i32) {
    %c0_i32 = arith.constant 0 : i32
    %c0_i32_0 = arith.constant 0 : i32
    %c0_i32_1 = arith.constant 0 : i32
    return %c0_i32, %c0_i32_0 : i32, i32
  }
  func.func @transform_12(%arg0: i32) -> (i32, i32) {
    %c0_i32 = arith.constant 0 : i32
    %c0_i32_0 = arith.constant 0 : i32
    %c0_i32_1 = arith.constant 0 : i32
    return %c0_i32, %c0_i32_0 : i32, i32
  }
  func.func @transform_13(%arg0: i32) -> (i32, i32) {
    %c0_i32 = arith.constant 0 : i32
    %c0_i32_0 = arith.constant 0 : i32
    %c0_i32_1 = arith.constant 0 : i32
    return %c0_i32, %c0_i32_0 : i32, i32
  }
  func.func @transform_14(%arg0: i32) -> (i32, i32) {
    %c0_i32 = arith.constant 0 : i32
    %c0_i32_0 = arith.constant 0 : i32
    %c0_i32_1 = arith.constant 0 : i32
    return %c0_i32, %c0_i32_0 : i32, i32
  }
  func.func @transform_15(%arg0: i32) -> (i32, i32) {
    %c0_i32 = arith.constant 0 : i32
    %c0_i32_0 = arith.constant 0 : i32
    %c0_i32_1 = arith.constant 0 : i32
    return %c0_i32, %c0_i32_0 : i32, i32
  }
  func.func @transform_16(%arg0: i32) -> (i32, i32) {
    %c0_i32 = arith.constant 0 : i32
    %c0_i32_0 = arith.constant 0 : i32
    %c0_i32_1 = arith.constant 0 : i32
    return %c0_i32, %c0_i32_0 : i32, i32
  }
  func.func @transform_17(%arg0: i32) -> (i32, i32) {
    %c0_i32 = arith.constant 0 : i32
    %c0_i32_0 = arith.constant 0 : i32
    %c0_i32_1 = arith.constant 0 : i32
    return %c0_i32, %c0_i32_0 : i32, i32
  }
  func.func @transform_18(%arg0: i32) -> (i32, i32) {
    %c0_i32 = arith.constant 0 : i32
    %c0_i32_0 = arith.constant 0 : i32
    %c0_i32_1 = arith.constant 0 : i32
    return %c0_i32, %c0_i32_0 : i32, i32
  }
  func.func @transform_19(%arg0: i32) -> (i32, i32) {
    %c0_i32 = arith.constant 0 : i32
    %c0_i32_0 = arith.constant 0 : i32
    %c0_i32_1 = arith.constant 0 : i32
    return %c0_i32, %c0_i32_0 : i32, i32
  }
  func.func @transform_20(%arg0: i32) -> (i32, i32) {
    %c0_i32 = arith.constant 0 : i32
    %c0_i32_0 = arith.constant 0 : i32
    %c0_i32_1 = arith.constant 0 : i32
    return %c0_i32, %c0_i32_0 : i32, i32
  }
  func.func @transform_21(%arg0: i32) -> (i32, i32) {
    %c0_i32 = arith.constant 0 : i32
    %c0_i32_0 = arith.constant 0 : i32
    %c0_i32_1 = arith.constant 0 : i32
    return %c0_i32, %c0_i32_0 : i32, i32
  }
  func.func @transform_22(%arg0: i32) -> (i32, i32) {
    %c0_i32 = arith.constant 0 : i32
    %c0_i32_0 = arith.constant 0 : i32
    %c0_i32_1 = arith.constant 0 : i32
    return %c0_i32, %c0_i32_0 : i32, i32
  }
  func.func @transform_23(%arg0: i32) -> (i32, i32) {
    %c0_i32 = arith.constant 0 : i32
    %c0_i32_0 = arith.constant 0 : i32
    %c0_i32_1 = arith.constant 0 : i32
    return %c0_i32, %c0_i32_0 : i32, i32
  }
  func.func @transform_24(%arg0: i32) -> (i32, i32) {
    %c0_i32 = arith.constant 0 : i32
    %c0_i32_0 = arith.constant 0 : i32
    %c0_i32_1 = arith.constant 0 : i32
    return %c0_i32, %c0_i32_0 : i32, i32
  }
  func.func @transform_25(%arg0: i32) -> (i32, i32, i32) {
    %c0_i32 = arith.constant 0 : i32
    %c0_i32_0 = arith.constant 0 : i32
    %c0_i32_1 = arith.constant 0 : i32
    return %arg0, %c0_i32, %c0_i32_0 : i32, i32, i32
  }
}

</mosaic_0001>

<bundles_post_ra>
// kernel: tpu_custom_call.1
= control target key start
LH: loop header
LB: loop body
LE: loop exit
PB: predicated region body
PF: predicated region fallthrough
CT: control target
= control target key end

     0   :  { %s2304_s0 = inlined_call_operand.vmem [shape: f32[2,8,32], index: 0, kind: input, shape index: {}]   ;;  %s2305_s1 = inlined_call_operand.vmem [shape: f32[2,8,32], index: 1, kind: input, shape index: {}]   ;;  %s2306_s2 = inlined_call_operand.vmem [shape: f32[16,1], index: 2, kind: input, shape index: {}]   ;;  %s2307_s3 = inlined_call_operand.hbm [shape: f32[2,1,8], index: 3, kind: input, shape index: {}]   ;;  %s2308_s4 = inlined_call_operand.hbm [shape: f32[2,1,8], index: 4, kind: input, shape index: {}]   ;;  %s2309_s5 = inlined_call_operand.vmem [shape: bf16[32,96], index: 5, kind: input, shape index: {}]   ;;  %s2310_s6 = inlined_call_operand.hbm [shape: f32[1,96], index: 6, kind: input, shape index: {}]   ;;  %s2311_s7 = inlined_call_operand.vmem [shape: bf16[32,32], index: 7, kind: input, shape index: {}]   ;;  %s2312_s8 = inlined_call_operand.hbm [shape: f32[1,32], index: 8, kind: input, shape index: {}]   ;;  %s2313_s9 = inlined_call_operand.hbm [shape: f32[1,32], index: 9, kind: input, shape index: {}]   ;;  %s2314_s10 = inlined_call_operand.hbm [shape: f32[1,32], index: 10, kind: input, shape index: {}]   ;;  %s2315_s11 = inlined_call_operand.hbm [shape: bf16[32,32], index: 11, kind: input, shape index: {}]   ;;  %s2316_s12 = inlined_call_operand.hbm [shape: f32[1,32], index: 12, kind: input, shape index: {}]   ;;  %s2317_s13 = inlined_call_operand.hbm [shape: bf16[32,64], index: 13, kind: input, shape index: {}]   ;;  %s2318_s14 = inlined_call_operand.hbm [shape: f32[1,64], index: 14, kind: input, shape index: {}]   ;;  %s2319_s15 = inlined_call_operand.hbm [shape: bf16[32,32], index: 15, kind: input, shape index: {}]   ;;  %s2320_s16 = inlined_call_operand.hbm [shape: f32[1,32], index: 16, kind: input, shape index: {}]   ;;  %s2321_s17 = inlined_call_operand.vmem [shape: f32[1,32], index: 17, kind: input, shape index: {}]   ;;  %s2322_s18 = inlined_call_operand.vmem [shape: f32[1,32], index: 18, kind: input, shape index: {}]   ;;  %s2323_s19 = inlined_call_operand.hbm [shape: bf16[32,64], index: 19, kind: input, shape index: {}]   ;;  %s2324_s20 = inlined_call_operand.vmem [shape: f32[1,64], index: 20, kind: input, shape index: {}]   ;;  %s2325_s21 = inlined_call_operand.vmem [shape: bf16[64,32], index: 21, kind: input, shape index: {}]   ;;  %s2326_s22 = inlined_call_operand.vmem [shape: f32[1,32], index: 22, kind: input, shape index: {}]   ;;  %s2327_s23 = inlined_call_operand.vmem [shape: f32[1,32], index: 23, kind: input, shape index: {}]   ;;  %s2328_s24 = inlined_call_operand.vmem [shape: f32[1,32], index: 24, kind: input, shape index: {}]   ;;  %s2329_s25 = inlined_call_operand.hbm [shape: f32[2,8,32], index: 25, kind: output, shape index: {}]  }
   0x1   :  { %2337 = sst [smem:[#allocation32_spill]] %s2304_s0 }
   0x2   :  { %2338 = sst [smem:[#allocation33_spill]] %s2305_s1 }
   0x3   :  { %2339 = sst [smem:[#allocation34_spill]] %s2306_s2 }
   0x4   :  { %2340 = sst [smem:[#allocation35_spill]] %s2307_s3 }
   0x5   :  { %2341 = sst [smem:[#allocation36_spill]] %s2308_s4 }
   0x6   :  { %2342 = sst [smem:[#allocation37_spill]] %s2309_s5 }
   0x7   :  { %2343 = sst [smem:[#allocation38_spill]] %s2310_s6 }
   0x8   :  { %2344 = sst [smem:[#allocation39_spill]] %s2311_s7 }
   0x9   :  { %2345 = sst [smem:[#allocation40_spill]] %s2312_s8 }
   0xa   :  { %2346 = sst [smem:[#allocation41_spill]] %s2313_s9 }
   0xb   :  { %30 = vsyncpa [#allocation3], 0 }
   0xc   :  { %31 = vsyncpa [#allocation6], 0 }
   0xd   :  { %32 = vsyncpa [#allocation9], 0 }
   0xe   :  { %33 = vsyncpa [#allocation12], 0 }
   0xf   :  { %34 = vsyncpa [#allocation15], 0 }
  0x10   :  { %35 = vsyncpa [#allocation18], 0 }
  0x11   :  { %36 = vsyncpa [#allocation21], 0 }
  0x12   :  { %37 = vsyncpa [#allocation4], 0  ;;  %s2347_s6 = sld [smem:[#allocation36_spill]]  ;;  %s1878_s7 = smov [#allocation5]  }
  0x13   :  { %s63_s3 = sshll.u32 %s1878_s7, 4  ;;  %s2348_s8 = sld [smem:[#allocation40_spill]]  ;;  %s64_s3 = int_to_ptr.vmem [resolvable:$true] %s63_s3 }
  0x14   :  { %s2335_s4 = smov 16   ;;  %s2336_s28 = smov 1  }
  0x15   :  { %s1881_s9 = smov [#allocation8]   ;;  %s112_s2 = sshll.u32 %s2314_s10, 4  ;;  %s113_s2 = int_to_ptr.hbm [resolvable:$true] %s112_s2 }
  0x16   :  { %s92_s5 = sshll.u32 %s1881_s9, 4  ;;  %s136_s26 = sshll.u32 %s2316_s12, 4  ;;  %s93_s5 = int_to_ptr.vmem [resolvable:$true] %s92_s5  ;;  %s137_s26 = int_to_ptr.hbm [resolvable:$true] %s136_s26 }
  0x17   :  { %s1882_s1 = smov [#allocation11]   ;;  %s1884_s0 = smov [#allocation17]  }
  0x18   :  { %s61_s30 = sshll.u32 %s2347_s6, 4  ;;  %s162_s12 = sshll.u32 %s1884_s0, 4  ;;  %s62_s30 = int_to_ptr.hbm [resolvable:$true] %s61_s30  ;;  %s163_s12 = int_to_ptr.vmem [resolvable:$true] %s162_s12 }
  0x19   :  { %s90_s27 = sshll.u32 %s2348_s8, 4  ;;  %s114_s8 = sshll.u32 %s1882_s1, 4  ;;  %s91_s27 = int_to_ptr.hbm [resolvable:$true] %s90_s27  ;;  %s115_s8 = int_to_ptr.vmem [resolvable:$true] %s114_s8 }
  0x1a   :  { %69 = dma.hbm_to_vmem [thread:$0]  %s62_s30, 32, %s64_s3, [#allocation6], %s2335_s4, %s2335_s4, %s2336_s28  }
  0x1b   :  { %95 = dma.hbm_to_vmem [thread:$0]  %s91_s27, 16, %s93_s5, [#allocation9]  }
  0x1c   :  { %117 = dma.hbm_to_vmem [thread:$0]  %s113_s2, 16, %s115_s8, [#allocation12]  }
  0x1d   :  { %s1883_s30 = smov [#allocation14]   ;;  %s160_s28 = sshll.u32 %s2318_s14, 4  ;;  %s161_s28 = int_to_ptr.hbm [resolvable:$true] %s160_s28 }
  0x1e   :  { %s138_s3 = sshll.u32 %s1883_s30, 4  ;;  %s184_s5 = sshll.u32 %s2320_s16, 4  ;;  %s139_s3 = int_to_ptr.vmem [resolvable:$true] %s138_s3  ;;  %s185_s5 = int_to_ptr.hbm [resolvable:$true] %s184_s5 }
  0x1f   :  { %141 = dma.hbm_to_vmem [thread:$0]  %s137_s26, 16, %s139_s3, [#allocation15]  }
  0x20   :  { %165 = dma.hbm_to_vmem [thread:$0]  %s161_s28, 16, %s163_s12, [#allocation18]  }
  0x21   :  { %s1885_s29 = smov [#allocation20]   ;;  %s2349_s1 = sld [smem:[#allocation35_spill]] }
  0x22   :  { %s186_s2 = sshll.u32 %s1885_s29, 4  ;;  %s2350_s26 = sld [smem:[#allocation38_spill]]  ;;  %s187_s2 = int_to_ptr.vmem [resolvable:$true] %s186_s2 }
  0x23   :  { %189 = dma.hbm_to_vmem [thread:$0]  %s185_s5, 16, %s187_s2, [#allocation21]  }
  0x24   :  { %s1886_s3 = smov [#allocation2]   ;;  %s2351_s9 = smov 1  }
  0x25   :  { %s50_s16 = sshll.u32 %s1886_s3, 4  ;;  %s2352_s10 = smov 16   ;;  %s51_s16 = int_to_ptr.vmem [resolvable:$true] %s50_s16 }
  0x26   :  { %s1887_s28 = smov [#allocation7]   ;;  %s2353_s29 = sld [smem:[#allocation41_spill]] }
  0x27   :  { %s48_s8 = sshll.u32 %s2349_s1, 4  ;;  %s79_s27 = sshll.u32 %s1887_s28, 4  ;;  %s49_s8 = int_to_ptr.hbm [resolvable:$true] %s48_s8  ;;  %s80_s27 = int_to_ptr.vmem [resolvable:$true] %s79_s27 }
  0x28   :  { %s77_s30 = sshll.u32 %s2350_s26, 4  ;;  %s122_s7 = sshll.u32 %s2315_s11, 4  ;;  %s78_s30 = int_to_ptr.hbm [resolvable:$true] %s77_s30  ;;  %s123_s7 = int_to_ptr.hbm [resolvable:$true] %s122_s7 }
  0x29   :  { %56 = dma.hbm_to_vmem [thread:$0]  %s49_s8, 32, %s51_s16, [#allocation3], %s2352_s10, %s2352_s10, %s2351_s9  }
  0x2a   :  { %82 = dma.hbm_to_vmem [thread:$0]  %s78_s30, 16, %s80_s27, [#allocation6]  }
  0x2b   :  { %s1888_s1 = smov [#allocation10]   ;;  %s1889_s4 = smov [#allocation13]  }
  0x2c   :  { %s101_s6 = sshll.u32 %s2353_s29, 4  ;;  %s103_s14 = sshll.u32 %s1888_s1, 4  ;;  %s102_s6 = int_to_ptr.hbm [resolvable:$true] %s101_s6  ;;  %s104_s14 = int_to_ptr.vmem [resolvable:$true] %s103_s14 }
  0x2d   :  { %106 = dma.hbm_to_vmem [thread:$0]  %s102_s6, 16, %s104_s14, [#allocation9]  }
  0x2e   :  { %s124_s8 = sshll.u32 %s1889_s4, 4  ;;  %s1890_s26 = smov 64   ;;  %s125_s8 = int_to_ptr.vmem [resolvable:$true] %s124_s8 }
  0x2f   :  { %s1891_s3 = smov 4   ;;  %s146_s30 = sshll.u32 %s2317_s13, 4  ;;  %s147_s30 = int_to_ptr.hbm [resolvable:$true] %s146_s30 }
  0x30   :  { %130 = dma.hbm_to_vmem [thread:$0]  %s123_s7, 256, %s125_s8, [#allocation12], %s1890_s26, %s1890_s26, %s1891_s3  }
  0x31   :  { %s1892_s10 = smov [#allocation16]   ;;  %s170_s0 = sshll.u32 %s2319_s15, 4  ;;  %s171_s0 = int_to_ptr.hbm [resolvable:$true] %s170_s0 }
  0x32   :  { %s148_s11 = sshll.u32 %s1892_s10, 4  ;;  %s1893_s12 = smov [#allocation19]   ;;  %s149_s11 = int_to_ptr.vmem [resolvable:$true] %s148_s11 }
  0x33   :  { %154 = dma.hbm_to_vmem [thread:$0]  %s147_s30, 256, %s149_s11, [#allocation15], %s1890_s26, %s1890_s26, %s1891_s3  }
  0x34   :  { %s172_s29 = sshll.u32 %s1893_s12, 4  ;;  %s198_s2 = sshll.u32 %s2323_s19, 4  ;;  %s173_s29 = int_to_ptr.vmem [resolvable:$true] %s172_s29  ;;  %s199_s2 = int_to_ptr.hbm [resolvable:$true] %s198_s2 }
  0x35   :  { %178 = dma.hbm_to_vmem [thread:$0]  %s171_s0, 256, %s173_s29, [#allocation18], %s1890_s26, %s1890_s26, %s1891_s3  }
  0x36   :  { %s1894_s13 = smov [#allocation22]  }
  0x37   :  { %s200_s7 = sshll.u32 %s1894_s13, 4  ;;  %s201_s7 = int_to_ptr.vmem [resolvable:$true] %s200_s7 }
  0x38   :  { %206 = dma.hbm_to_vmem [thread:$0]  %s199_s2, 256, %s201_s7, [#allocation21], %s1890_s26, %s1890_s26, %s1891_s3  }
  0x39   :  { %1862 = dma.done.wait [#allocation3], 32  }
  0x3a   :  { %1863 = vsyncadd [#allocation3], 4294967264 }
  0x3b   :  { %1864 = dma.done.wait [#allocation6], 48  }
  0x3c   :  { %1865 = vsyncadd [#allocation6], 4294967248 }
  0x3d   :  { %1866 = dma.done.wait [#allocation9], 32  }
  0x3e   :  { %1867 = vsyncadd [#allocation9], 4294967264 }
  0x3f   :  { %1868 = dma.done.wait [#allocation12], 272  }
  0x40   :  { %1869 = vsyncadd [#allocation12], 4294967024 }
  0x41   :  { %1870 = dma.done.wait [#allocation15], 272  }
  0x42   :  { %1871 = vsyncadd [#allocation15], 4294967024 }
  0x43   :  { %1872 = dma.done.wait [#allocation18], 272  }
  0x44   :  { %1873 = vsyncadd [#allocation18], 4294967024 }
  0x45   :  { %1874 = dma.done.wait [#allocation21], 272  }
  0x46   :  { %1875 = vsyncadd [#allocation21], 4294967024  ;;  %s2354_s1 = sld [smem:[#allocation37_spill]]  ;;  %vm321_vm0 = vcmask 261120   ;;  %v1467_v5 = vld [vmem:[#allocation7] ss:$0 sm:$0xff]  ;;  %v276_v34 = vlaneseq }
  0x47   :  { %s2355_s16 = sld [smem:[#allocation32_spill]]  ;;  %s1895_s10 = smov 80   ;;  %vm351_vm1 = vcmask 130048   ;;  %v274_v35 = vld [vmem:[#allocation2] sm:$0x1]  ;;  %v1898_v38 = vmov 0.0  }
  0x48   :  { %s1896_s11 = smov 96   ;;  %s1897_s28 = smov 112   ;;  %v277_v36 = vshrl.u32 %v276_v34, 7  ;;  %v279_v37 = vand.u32 127, %v276_v34  ;;  %vm280_vm2 = vcmp.gt.f32.partialorder %v274_v35, 0.5  ;;  %vm395_vm4 = vcmask 64512  }
  0x49   :  { %v282_v39 = vsel %vm280_vm2, -1e+09, %v1898_v38  ;;  %v275_v43 = vld [vmem:[#allocation2 + $0x1] sm:$0x1]  ;;  %s1899_s27 = smov 48   ;;  %vm425_vm6 = vcmask 1043456  }
  0x4a   :  { %vm284_vm3 = vcmp.gt.s32.totalorder %v279_v37, %v277_v36  ;;  %v288_v40 = vperm.slane %v282_v39, 0  ;;  %vm281_vm5 = vcmp.gt.f32.partialorder %v275_v43, 0.5  ;;  %s2356_s12 = sld [smem:[#allocation39_spill]]  ;;  %s1314_s15 = sshll.u32 %s2329_s25, 4  ;;  %s1315_s15 = int_to_ptr.hbm [resolvable:$true] %s1314_s15 }
  0x4b   :  { %v285_v41 = vsel %vm284_vm3, -1e+09, %v1898_v38  ;;  %v283_v50 = vsel %vm281_vm5, -1e+09, %v1898_v38  ;;  %s2357_s13 = sld [smem:[#allocation34_spill]]  ;;  %s1903_s19 = smov 128  }
  0x4c   :  { %v1423_v0 = vld [vmem:[%s2354_s1 + $0x8] sm:$0xff]  ;;  %v1422_v1 = vld [vmem:[%s2354_s1] sm:$0xff]  ;;  %v292_v42 = vadd.f32 %v288_v40, %v285_v41  ;;  %v289_v51 = vperm.slane %v283_v50, 0  ;;  %s2358_s14 = sld [smem:[#allocation33_spill]]  ;;  %s1904_s1 = smov 8  }
  0x4d   :  { %v2097_v2 = vld [vmem:[%s2355_s16] sm:$0xff]  ;;  %v2102_v3 = vld [vmem:[%s2355_s16 + $0x8] sm:$0xff]  ;;  %331 = vmatpush.bf16.msra.mxu0 %v1423_v0 }
  0x4e   :  { %v300_v4 = vpack.c.bf16 %v2102_v3, %v2097_v2  ;;  %v293_v54 = vadd.f32 %v289_v51, %v285_v41 }
  0x51   :  { %332 = vmatpush.bf16.msra.mxu0 %v1422_v1 }
  0x54   :  { %1341 = vmatmul.msk.bf16.vlgmr.msra.gmra.mxu0 %vm321_vm0, %v300_v4 }
  0xd1   :  { %v334_v6 = vpop.f32.mrf.mxu0 }
  0xd2   :  { %v335_v7 = vadd.f32 %v1467_v5, %v334_v6 }
  0xd4   :  { %v339_v8 = vmul.f32 0.25, %v335_v7  ;;  %v344_v9 = vpack.c.bf16 %v335_v7, %v335_v7 }
  0xd6   :  { %v342_v10 = vpack.c.bf16 %v339_v8, %v339_v8  ;;  %v347_v11 = vunpack.c.l.b16 %v344_v9 }
  0xd8   :  { %v2107_v12 = vpack.c.b16 %v347_v11, %v347_v11  ;;  %v467_v13 = vunpack.c.l.b16 %v342_v10 }
  0xd9   :  { %v336_v14 = vpop.f32.mrf.mxu0 }
  0xda   :  { %v337_v15 = vadd.f32 %v1467_v5, %v336_v14  ;;  %471 = vrot.lane.b32.xlu1 %v2107_v12, %s1895_s10  ;;  %349 = vrot.lane.b32.xlu0 %v2107_v12, %s1896_s11  ;;  %v468_v16 = vpack.c.b16 %v467_v13, %v467_v13 }
  0xdc   :  { %v340_v17 = vmul.f32 0.25, %v337_v15  ;;  %v345_v18 = vpack.c.bf16 %v337_v15, %v337_v15  ;;  %469 = vrot.lane.b32.xlu2 %v468_v16, %s1897_s28 }
  0xde   :  { %v343_v19 = vpack.c.bf16 %v340_v17, %v340_v17  ;;  %v372_v20 = vunpack.c.l.b16 %v345_v18 }
  0xe0   :  { %v2114_v21 = vpack.c.b16 %v372_v20, %v372_v20  ;;  %v493_v22 = vunpack.c.l.b16 %v343_v19 }
  0xe2   :  { %497 = vrot.lane.b32.xlu1 %v2114_v21, %s1895_s10  ;;  %374 = vrot.lane.b32.xlu0 %v2114_v21, %s1896_s11  ;;  %v494_v23 = vpack.c.b16 %v493_v22, %v493_v22 }
  0xe4   :  { %495 = vrot.lane.b32.xlu2 %v494_v23, %s1897_s28 }
 0x136   :  { %v470_v28 = vpop.permute.xlu2 %469 }
 0x13e   :  { %v496_v33 = vpop.permute.xlu2 %495 }
 0x14c   :  { %v472_v24 = vpop.permute.xlu1 %471  ;;  %v350_v25 = vpop.permute.xlu0 %349 }
 0x14d   :  { %v356_v26 = vsel %vm351_vm1, %v350_v25, 0  ;;  %v477_v27 = vsel %vm351_vm1, %v472_v24, 0 }
 0x14e   :  { %365 = vmatpush.bf16.xpose.msra.mxu1 %v356_v26  ;;  %486 = vmatpush.bf16.xpose.msrb.mxu0 %v477_v27 }
 0x154   :  { %v498_v29 = vpop.permute.xlu1 %497  ;;  %v375_v30 = vpop.permute.xlu0 %374 }
 0x155   :  { %1342 = vmatmul.msk.bf16.vlgmr.msra.gmra.mxu1 %vm351_vm1, %v342_v10  ;;  %1346 = vmatmul.msk.bf16.vlgmr.msrb.gmra.mxu0 %vm351_vm1, %v470_v28  ;;  %v380_v31 = vsel %vm351_vm1, %v375_v30, 0  ;;  %v503_v32 = vsel %vm351_vm1, %v498_v29, 0 }
 0x156   :  { %389 = vmatpush.bf16.xpose.msra.mxu2 %v380_v31  ;;  %512 = vmatpush.bf16.xpose.msrb.mxu1 %v503_v32 }
 0x15d   :  { %1343 = vmatmul.msk.bf16.vlgmr.msra.gmra.mxu2 %vm351_vm1, %v343_v19 }
 0x165   :  { %1347 = vmatmul.msk.bf16.vlgmr.msrb.gmra.mxu1 %vm351_vm1, %v496_v33 }
 0x1d2   :  { %v367_v44 = vpop.f32.mrf.mxu1  ;;  %v488_v45 = vpop.f32.mrf.mxu0 }
 0x1d3   :  { %v368_v46 = vadd.f32 %v367_v44, %v292_v42  ;;  %v489_v47 = vadd.f32 %v488_v45, %v292_v42 }
 0x1d5   :  { %v518_v48 = vsel %vm395_vm4, %v489_v47, -inf  ;;  %v396_v49 = vsel %vm395_vm4, %v368_v46, -inf }
 0x1d6   :  { %519 = vmax.xlane.f32.xlu2 %v518_v48  ;;  %397 = vmax.xlane.f32.xlu0 %v396_v49 }
 0x1da   :  { %v369_v52 = vpop.f32.mrf.mxu1  ;;  %v490_v53 = vpop.f32.mrf.mxu0 }
 0x1e0   :  { %v391_v55 = vpop.f32.mrf.mxu2 }
 0x1e1   :  { %v392_v56 = vadd.f32 %v391_v55, %v293_v54 }
 0x1e2   :  { %v514_v57 = vpop.f32.mrf.mxu1 }
 0x1e3   :  { %v515_v58 = vadd.f32 %v514_v57, %v293_v54  ;;  %v399_v59 = vsel %vm395_vm4, %v392_v56, -inf }
 0x1e4   :  { %400 = vmax.xlane.f32.xlu1 %v399_v59 }
 0x1e5   :  { %v521_v60 = vsel %vm395_vm4, %v515_v58, -inf }
 0x1e6   :  { %522 = vmax.xlane.f32.xlu2 %v521_v60  ;;  %v1468_v60 = vld [vmem:[#allocation8] ss:$0 sm:$0xff] }
 0x1e8   :  { %v393_v61 = vpop.f32.mrf.mxu2 }
 0x1ea   :  { %v516_v62 = vpop.f32.mrf.mxu1  ;;  %442 = vrot.lane.b32.xlu0 %v2114_v21, %s1890_s26 }
 0x1fd   :  { %420 = vrot.lane.b32.xlu1 %v2107_v12, %s1890_s26 }
 0x205   :  { %542 = vrot.lane.b32.xlu1 %v2107_v12, %s1899_s27 }
 0x249   :  { %v398_v63 = vpop.xlane.xlu0 %397  ;;  %v520_v6 = vpop.xlane.xlu2 %519 }
 0x24a   :  { %v402_v0 = vsub.f32 %v368_v46, %v398_v63  ;;  %v524_v9 = vsub.f32 %v489_v47, %v520_v6  ;;  %v1424_v46 = vld [vmem:[%s2356_s12] sm:$0xff]  ;;  %v1425_v47 = vld [vmem:[%s2356_s12 + $0x8] sm:$0xff] }
 0x24b   :  { %626 = vmatpush.bf16.msra.mxu1 %v1424_v46  ;;  %603 = vmatpush.bf16.msra.mxu0 %v1425_v47 }
 0x24c   :  { %v404_v1 = vmul.f32 1.442695, %v402_v0  ;;  %v526_v11 = vmul.f32 1.442695, %v524_v9 }
 0x24e   :  { %1480 = vpow2.f32 %v404_v1 }
 0x254   :  { %v1481_v4 = vpop.eup %1480 }
 0x255   :  { %v408_v5 = vsel %vm395_vm4, %v1481_v4, 0.0 }
 0x256   :  { %409 = vadd.xlane.f32.xlu0 %v408_v5 }
 0x257   :  { %v401_v7 = vpop.xlane.xlu1 %400 }
 0x258   :  { %v403_v8 = vsub.f32 %v392_v56, %v401_v7 }
 0x259   :  { %v523_v13 = vpop.xlane.xlu2 %522 }
 0x25a   :  { %v406_v10 = vmul.f32 1.442695, %v403_v8  ;;  %v525_v15 = vsub.f32 %v515_v58, %v523_v13  ;;  %v1900_v58 = vmov 0  }
 0x25b   :  { %1465 = vset.pattern.permute.xlu2 %v1900_v58  ;;  %1466 = vset.pattern.permute.xlu0 %v1900_v58  ;;  %v1470_v58 = vld [vmem:[#allocation11] ss:$0 sm:$0xff] }
 0x25c   :  { %1482 = vpow2.f32 %v406_v10  ;;  %v528_v16 = vmul.f32 1.442695, %v525_v15  ;;  %v443_v19 = vpop.permute.xlu0 %442  ;;  %v272_v10 = vld [vmem:[%s2357_s13] sm:$0xff] }
 0x25d   :  { %1484 = vpow2.f32 %v526_v11  ;;  %v448_v24 = vsel %vm425_vm6, %v443_v19, 0  ;;  %v1901_v11 = vmov 32.0  }
 0x25e   :  { %1486 = vpow2.f32 %v528_v16 }
 0x262   :  { %v1483_v14 = vpop.eup %1482 }
 0x263   :  { %v411_v12 = vsel %vm395_vm4, %v1483_v14, 0.0  ;;  %v1485_v17 = vpop.eup %1484 }
 0x264   :  { %412 = vadd.xlane.f32.xlu2 %v411_v12  ;;  %v530_v18 = vsel %vm395_vm4, %v1485_v17, 0.0  ;;  %v1487_v22 = vpop.eup %1486 }
 0x265   :  { %v533_v25 = vsel %vm395_vm4, %v1487_v22, 0.0 }
 0x26a   :  { %563 = vrot.lane.b32.xlu0 %v2114_v21, %s1899_s27 }
 0x26c   :  { %531 = vadd.xlane.f32.xlu2 %v530_v18 }
 0x26f   :  { %v421_v20 = vpop.permute.xlu1 %420 }
 0x270   :  { %v427_v23 = vsel %vm425_vm6, %v421_v20, 0 }
 0x271   :  { %436 = vmatpush.bf16.msra.mxu3 %v427_v23  ;;  %v1429_v23 = vld [vmem:[#allocation16 + $0x8] sm:$0xff] }
 0x274   :  { %534 = vadd.xlane.f32.xlu2 %v533_v25  ;;  %v1428_v25 = vld [vmem:[#allocation16] sm:$0xff] }
 0x275   :  { %457 = vmatpush.bf16.msrb.mxu3 %v448_v24 }
 0x277   :  { %v543_v26 = vpop.permute.xlu1 %542 }
 0x278   :  { %v548_v27 = vsel %vm425_vm6, %v543_v26, 0 }
 0x279   :  { %557 = vmatpush.bf16.msrb.mxu2 %v548_v27 }
 0x2c9   :  { %v410_v21 = vpop.xlane.xlu0 %409 }
 0x2ca   :  { %1488 = vrcp.f32 %v410_v21 }
 0x2d0   :  { %v1489_v28 = vpop.eup %1488 }
 0x2d1   :  { %v416_v29 = vmul.f32 %v1489_v28, %v1481_v4  ;;  %v273_v28 = vld [vmem:[%s2357_s13 + $0x8] sm:$0xff] }
 0x2d3   :  { %v418_v30 = vpack.c.bf16 %v416_v29, %v416_v29  ;;  %v715_v29 = vld [vmem:[%s2358_s14] sm:$0xff] }
 0x2d5   :  { %1344 = vmatmul.msk.bf16.vlgmr.msra.gmra.mxu3 %vm395_vm4, %v418_v30  ;;  %v716_v30 = vld [vmem:[%s2358_s14 + $0x8] sm:$0xff] }
 0x2d7   :  { %v413_v31 = vpop.xlane.xlu2 %412 }
 0x2d8   :  { %1490 = vrcp.f32 %v413_v31  ;;  %v757_v31 = vpack.c.bf16 %v716_v30, %v715_v29 }
 0x2dc   :  { %v564_v32 = vpop.permute.xlu0 %563 }
 0x2dd   :  { %v569_v34 = vsel %vm425_vm6, %v564_v32, 0 }
 0x2de   :  { %v1491_v33 = vpop.eup %1490  ;;  %578 = vmatpush.bf16.msra.mxu3 %v569_v34  ;;  %v1427_v34 = vld [vmem:[#allocation13 + $0x8] sm:$0xff] }
 0x2df   :  { %v532_v35 = vpop.xlane.xlu2 %531  ;;  %v417_v36 = vmul.f32 %v1491_v33, %v1483_v14  ;;  %747 = vmatpush.bf16.msra.mxu2 %v1427_v34 }
 0x2e0   :  { %1492 = vrcp.f32 %v532_v35 }
 0x2e1   :  { %v419_v37 = vpack.c.bf16 %v417_v36, %v417_v36 }
 0x2e5   :  { %1345 = vmatmul.msk.bf16.vlgmr.msrb.gmra.mxu3 %vm395_vm4, %v419_v37  ;;  %v1426_v37 = vld [vmem:[#allocation13] sm:$0xff] }
 0x2e6   :  { %v1493_v39 = vpop.eup %1492  ;;  %787 = vmatpush.bf16.msrb.mxu3 %v1429_v23  ;;  %748 = vmatpush.bf16.msra.mxu2 %v1426_v37 }
 0x2e7   :  { %v538_v40 = vmul.f32 %v1493_v39, %v1485_v17  ;;  %v535_v41 = vpop.xlane.xlu2 %534 }
 0x2e8   :  { %1494 = vrcp.f32 %v535_v41 }
 0x2e9   :  { %v540_v42 = vpack.c.bf16 %v538_v40, %v538_v40  ;;  %1496 = vrcp.f32 %v1901_v11 }
 0x2ea   :  { %788 = vmatpush.bf16.msrb.mxu3 %v1428_v25 }
 0x2eb   :  { %1348 = vmatmul.msk.bf16.vlgmr.msrb.gmra.mxu2 %vm395_vm4, %v540_v42 }
 0x2ee   :  { %v1495_v43 = vpop.eup %1494 }
 0x2ef   :  { %v539_v44 = vmul.f32 %v1495_v43, %v1487_v22 }
 0x2f1   :  { %v541_v45 = vpack.c.bf16 %v539_v44, %v539_v44 }
 0x2f5   :  { %1349 = vmatmul.msk.bf16.vlgmr.msra.gmra.mxu3 %vm395_vm4, %v541_v45 }
 0x305   :  { %1377 = vmatmul.msk.bf16.vlgmr.msrb.gmra.mxu3 %vm321_vm0, %v757_v31 }
 0x358   :  { %v438_v48 = vpop.f32.mrf.mxu3 }
 0x360   :  { %v440_v49 = vpop.f32.mrf.mxu3 }
 0x368   :  { %v459_v50 = vpop.f32.mrf.mxu3 }
 0x369   :  { %v463_v51 = vpack.c.bf16 %v459_v50, %v438_v48 }
 0x36b   :  { %1359 = vmatmul.msk.bf16.vlgmr.msra.gmra.mxu1 %vm351_vm1, %v463_v51 }
 0x36e   :  { %v559_v52 = vpop.f32.mrf.mxu2 }
 0x370   :  { %v461_v53 = vpop.f32.mrf.mxu3 }
 0x376   :  { %v561_v54 = vpop.f32.mrf.mxu2 }
 0x377   :  { %v1469_v54 = vld [vmem:[#allocation10] ss:$0 sm:$0xff] }
 0x378   :  { %v580_v55 = vpop.f32.mrf.mxu3 }
 0x379   :  { %v584_v56 = vpack.c.bf16 %v580_v55, %v559_v52 }
 0x37b   :  { %1354 = vmatmul.msk.bf16.vlgmr.msra.gmra.mxu0 %vm351_vm1, %v584_v56 }
 0x380   :  { %v582_v57 = vpop.f32.mrf.mxu3 }
 0x3e8   :  { %v628_v59 = vpop.f32.mrf.mxu1 }
 0x3f0   :  { %v630_v4 = vpop.f32.mrf.mxu1 }
 0x3f8   :  { %v605_v61 = vpop.f32.mrf.mxu0 }
 0x3f9   :  { %v629_v62 = vadd.f32 %v628_v59, %v605_v61 }
 0x3fb   :  { %v636_v63 = vadd.f32 %v1468_v60, %v629_v62 }
 0x3fd   :  { %v638_v0 = vadd.f32 %v636_v63, %v2097_v2  ;;  %v1497_v2 = vpop.eup %1496 }
 0x3fe   :  { %v647_v13 = vmul.f32 32.0, %v1497_v2  ;;  %vm651_vm7 = vweird.f32 %v1497_v2 }
 0x3ff   :  { %v640_v1 = vsel %vm321_vm0, %v638_v0, 0.0 }
 0x400   :  { %641 = vadd.xlane.f32.xlu2 %v640_v1  ;;  %v607_v5 = vpop.f32.mrf.mxu0  ;;  %v648_v14 = vsub.f32 1.0, %v647_v13 }
 0x401   :  { %v631_v6 = vadd.f32 %v630_v4, %v607_v5 }
 0x402   :  { %v649_v15 = vmul.f32 %v1497_v2, %v648_v14 }
 0x403   :  { %v637_v7 = vadd.f32 %v1468_v60, %v631_v6  ;;  %v1471_v6 = vld [vmem:[#allocation17] ss:$0 sm:$0xff] }
 0x404   :  { %v650_v12 = vadd.f32 %v1497_v2, %v649_v15 }
 0x405   :  { %v639_v8 = vadd.f32 %v637_v7, %v2102_v3  ;;  %v790_v7 = vpop.f32.mrf.mxu3 }
 0x406   :  { %v2169_v16 = vsel %vm651_vm7, %v1497_v2, %v650_v12  ;;  %vm1228_vm7 = vcmask 523264  }
 0x407   :  { %v643_v9 = vsel %vm321_vm0, %v639_v8, 0.0 }
 0x408   :  { %644 = vadd.xlane.f32.xlu1 %v643_v9 }
 0x40d   :  { %v792_v13 = vpop.f32.mrf.mxu3 }
 0x40e   :  { %v793_v14 = vadd.f32 %v1471_v6, %v792_v13 }
 0x410   :  { %v799_v15 = vpack.c.bf16 %v793_v14, %v793_v14 }
 0x412   :  { %v829_v12 = vsel %vm351_vm1, %v799_v15, 0 }
 0x413   :  { %838 = vmatpush.bf16.xpose.msrb.mxu1 %v829_v12 }
 0x418   :  { %705 = vperm.xlu2 %1465, %v272_v10  }
 0x473   :  { %v642_v17 = vpop.xlane.xlu2 %641 }
 0x474   :  { %v653_v3 = vmul.f32 %v2169_v16, %v642_v17  ;;  %v893_v17 = vunpack.c.l.b16 %v799_v15 }
 0x476   :  { %v655_v18 = vsub.f32 %v638_v0, %v653_v3  ;;  %v2206_v3 = vpack.c.b16 %v893_v17, %v893_v17 }
 0x478   :  { %v657_v19 = vmul.f32 %v655_v18, %v655_v18 }
 0x47a   :  { %v659_v20 = vsel %vm321_vm0, %v657_v19, 0.0 }
 0x47b   :  { %660 = vadd.xlane.f32.xlu0 %v659_v20  ;;  %v645_v22 = vpop.xlane.xlu1 %644  ;;  %v2185_v32 = vpop.permute.xlu2 %705 }
 0x47c   :  { %v654_v24 = vmul.f32 %v2169_v16, %v645_v22 }
 0x47e   :  { %v656_v26 = vsub.f32 %v639_v8, %v654_v24  ;;  %v791_v8 = vadd.f32 %v1471_v6, %v790_v7 }
 0x480   :  { %v658_v27 = vmul.f32 %v656_v26, %v656_v26  ;;  %v798_v9 = vpack.c.bf16 %v791_v8, %v791_v8 }
 0x482   :  { %v662_v21 = vsel %vm321_vm0, %v658_v27, 0.0  ;;  %v810_v10 = vsel %vm351_vm1, %v798_v9, 0  ;;  %v869_v11 = vunpack.c.l.b16 %v798_v9 }
 0x483   :  { %663 = vadd.xlane.f32.xlu2 %v662_v21  ;;  %819 = vmatpush.bf16.xpose.msrb.mxu0 %v810_v10 }
 0x484   :  { %v2201_v2 = vpack.c.b16 %v869_v11, %v869_v11 }
 0x486   :  { %924 = vrot.lane.b32.xlu1 %v2201_v2, %s1897_s28 }
 0x48f   :  { %950 = vrot.lane.b32.xlu0 %v2206_v3, %s1897_s28 }
 0x49b   :  { %710 = vperm.xlu2 %1465, %v273_v28  }
 0x4ee   :  { %v661_v33 = vpop.xlane.xlu0 %660 }
 0x4ef   :  { %v665_v35 = vmul.f32 %v661_v33, %v2169_v16 }
 0x4f1   :  { %v667_v36 = vadd.f32 1e-05, %v665_v35 }
 0x4f3   :  { %1498 = vrsqrt.f32 %v667_v36  ;;  %vm675_vm9 = vweird.f32 %v667_v36 }
 0x4f6   :  { %v664_v39 = vpop.xlane.xlu2 %663 }
 0x4f7   :  { %v666_v40 = vmul.f32 %v664_v39, %v2169_v16  ;;  %v294_v39 = vld [vmem:[#allocation5] sm:$0x1] }
 0x4f8   :  { %v925_v31 = vpop.permute.xlu1 %924  ;;  %vm296_vm14 = vcmp.gt.f32.partialorder %v294_v39, 0.5 }
 0x4f9   :  { %v1499_v41 = vpop.eup %1498  ;;  %v668_v42 = vadd.f32 1e-05, %v666_v40  ;;  %v930_v33 = vsel %vm351_vm1, %v925_v31, 0  ;;  %v298_v40 = vsel %vm296_vm14, -1e+09, %v1898_v38 }
 0x4fa   :  { %v670_v43 = vmul.f32 %v1499_v41, %v667_v36  ;;  %vm676_vm8 = vweird.f32 %v1499_v41  ;;  %939 = vmatpush.bf16.xpose.msra.mxu0 %v930_v33 }
 0x4fb   :  { %1500 = vrsqrt.f32 %v668_v42  ;;  %vm677_vm10 = vmor %vm675_vm9, %vm676_vm8  ;;  %vm685_vm12 = vweird.f32 %v668_v42 }
 0x4fc   :  { %v671_v44 = vmul.f32 %v1499_v41, %v670_v43 }
 0x4fe   :  { %v672_v45 = vmul.f32 0.5, %v671_v44  ;;  %v2189_v0 = vpop.permute.xlu2 %710 }
 0x500   :  { %v673_v46 = vsub.f32 1.5, %v672_v45 }
 0x501   :  { %v1501_v47 = vpop.eup %1500  ;;  %v951_v34 = vpop.permute.xlu0 %950 }
 0x502   :  { %v674_v48 = vmul.f32 %v1499_v41, %v673_v46  ;;  %v680_v49 = vmul.f32 %v1501_v47, %v668_v42  ;;  %vm686_vm11 = vweird.f32 %v1501_v47  ;;  %v956_v35 = vsel %vm351_vm1, %v951_v34, 0 }
 0x503   :  { %vm687_vm13 = vmor %vm685_vm12, %vm686_vm11  ;;  %965 = vmatpush.bf16.xpose.msra.mxu1 %v956_v35  ;;  %v802_v42 = vperm.slane %v298_v40, 0 }
 0x504   :  { %v678_v50 = vsel %vm677_vm10, %v1499_v41, %v674_v48  ;;  %v681_v51 = vmul.f32 %v1501_v47, %v680_v49  ;;  %v295_v41 = vld [vmem:[#allocation5 + $0x1] sm:$0x1] }
 0x505   :  { %v689_v53 = vmul.f32 %v678_v50, %v655_v18  ;;  %v1472_v18 = vld [vmem:[#allocation14] ss:$0 sm:$0xff]  ;;  %vm297_vm15 = vcmp.gt.f32.partialorder %v295_v41, 0.5 }
 0x506   :  { %v682_v52 = vmul.f32 0.5, %v681_v51  ;;  %v299_v45 = vsel %vm297_vm15, -1e+09, %v1898_v38 }
 0x507   :  { %v695_v57 = vmul.f32 %v1469_v54, %v689_v53 }
 0x508   :  { %v683_v55 = vsub.f32 1.5, %v682_v52 }
 0x509   :  { %v701_v62 = vadd.f32 %v1470_v58, %v695_v57 }
 0x50a   :  { %v684_v56 = vmul.f32 %v1501_v47, %v683_v55 }
 0x50b   :  { %v2192_v1 = vmul.f32 %v2185_v32, %v701_v62 }
 0x50c   :  { %v688_v59 = vsel %vm687_vm13, %v1501_v47, %v684_v56  ;;  %v803_v47 = vperm.slane %v299_v45, 0 }
 0x50d   :  { %v690_v60 = vmul.f32 %v688_v59, %v656_v26 }
 0x50f   :  { %v696_v61 = vmul.f32 %v1469_v54, %v690_v60 }
 0x511   :  { %v702_v63 = vadd.f32 %v1470_v58, %v696_v61 }
 0x513   :  { %v2195_v4 = vmul.f32 %v2189_v0, %v702_v63 }
 0x515   :  { %v717_v5 = vpack.c.bf16 %v2195_v4, %v2192_v1 }
 0x517   :  { %1368 = vmatmul.msk.bf16.vlgmr.msra.gmra.mxu2 %vm321_vm0, %v717_v5 }
 0x59a   :  { %v750_v19 = vpop.f32.mrf.mxu2 }
 0x59b   :  { %v751_v20 = vadd.f32 %v1472_v18, %v750_v19 }
 0x59d   :  { %v755_v22 = vmul.f32 0.25, %v751_v20 }
 0x59f   :  { %v796_v23 = vpack.c.bf16 %v755_v22, %v755_v22 }
 0x5a1   :  { %v920_v24 = vunpack.c.l.b16 %v796_v23  ;;  %1378 = vmatmul.msk.bf16.vlgmr.msrb.gmra.mxu0 %vm351_vm1, %v796_v23 }
 0x5a2   :  { %v752_v25 = vpop.f32.mrf.mxu2 }
 0x5a3   :  { %v753_v26 = vadd.f32 %v1472_v18, %v752_v25  ;;  %v921_v27 = vpack.c.b16 %v920_v24, %v920_v24 }
 0x5a5   :  { %v756_v21 = vmul.f32 0.25, %v753_v26  ;;  %922 = vrot.lane.b32.xlu2 %v921_v27, %s1897_s28 }
 0x5a7   :  { %v797_v28 = vpack.c.bf16 %v756_v21, %v756_v21 }
 0x5a9   :  { %v946_v29 = vunpack.c.l.b16 %v797_v28  ;;  %1379 = vmatmul.msk.bf16.vlgmr.msrb.gmra.mxu1 %vm351_vm1, %v797_v28 }
 0x5ab   :  { %v947_v30 = vpack.c.b16 %v946_v29, %v946_v29 }
 0x5ad   :  { %948 = vrot.lane.b32.xlu2 %v947_v30, %s1897_s28 }
 0x5ff   :  { %v923_v36 = vpop.permute.xlu2 %922 }
 0x600   :  { %1382 = vmatmul.msk.bf16.vlgmr.msra.gmra.mxu0 %vm351_vm1, %v923_v36 }
 0x607   :  { %v949_v37 = vpop.permute.xlu2 %948 }
 0x608   :  { %1383 = vmatmul.msk.bf16.vlgmr.msra.gmra.mxu1 %vm351_vm1, %v949_v37 }
 0x61e   :  { %v821_v43 = vpop.f32.mrf.mxu0 }
 0x61f   :  { %v822_v44 = vadd.f32 %v821_v43, %v802_v42 }
 0x621   :  { %v844_v46 = vsel %vm395_vm4, %v822_v44, -inf }
 0x622   :  { %845 = vmax.xlane.f32.xlu2 %v844_v46 }
 0x626   :  { %v823_v48 = vpop.f32.mrf.mxu0  ;;  %v840_v49 = vpop.f32.mrf.mxu1 }
 0x627   :  { %v841_v50 = vadd.f32 %v840_v49, %v803_v47 }
 0x629   :  { %v847_v51 = vsel %vm395_vm4, %v841_v50, -inf }
 0x62a   :  { %848 = vmax.xlane.f32.xlu0 %v847_v51 }
 0x62e   :  { %v842_v52 = vpop.f32.mrf.mxu1 }
 0x62f   :  { %v1431_v52 = vld [vmem:[#allocation19 + $0x8] sm:$0xff] }
 0x630   :  { %1056 = vmatpush.bf16.msrb.mxu0 %v1431_v52 }
 0x63e   :  { %895 = vrot.lane.b32.xlu0 %v2206_v3, %s1896_s11 }
 0x67d   :  { %v941_v53 = vpop.f32.mrf.mxu0 }
 0x67e   :  { %v942_v54 = vadd.f32 %v941_v53, %v802_v42  ;;  %v1430_v42 = vld [vmem:[#allocation19] sm:$0xff] }
 0x67f   :  { %1079 = vmatpush.bf16.msrb.mxu1 %v1430_v42 }
 0x680   :  { %v971_v55 = vsel %vm395_vm4, %v942_v54, -inf }
 0x681   :  { %972 = vmax.xlane.f32.xlu1 %v971_v55 }
 0x685   :  { %v943_v38 = vpop.f32.mrf.mxu0  ;;  %v967_v56 = vpop.f32.mrf.mxu1 }
 0x686   :  { %v968_v57 = vadd.f32 %v967_v56, %v803_v47 }
 0x688   :  { %v974_v58 = vsel %vm395_vm4, %v968_v57, -inf }
 0x689   :  { %975 = vmax.xlane.f32.xlu2 %v974_v58  ;;  %v1473_v58 = vld [vmem:[#allocation20] ss:$0 sm:$0xff] }
 0x68d   :  { %v969_v59 = vpop.f32.mrf.mxu1 }
 0x695   :  { %v846_v60 = vpop.xlane.xlu2 %845 }
 0x696   :  { %v850_v61 = vsub.f32 %v822_v44, %v846_v60 }
 0x698   :  { %v852_v62 = vmul.f32 1.442695, %v850_v61 }
 0x69a   :  { %1502 = vpow2.f32 %v852_v62 }
 0x69d   :  { %v849_v63 = vpop.xlane.xlu0 %848 }
 0x69e   :  { %v851_v5 = vsub.f32 %v841_v50, %v849_v63 }
 0x6a0   :  { %v1503_v6 = vpop.eup %1502  ;;  %v854_v7 = vmul.f32 1.442695, %v851_v5 }
 0x6a1   :  { %871 = vrot.lane.b32.xlu2 %v2201_v2, %s1896_s11  ;;  %v856_v8 = vsel %vm395_vm4, %v1503_v6, 0.0 }
 0x6a2   :  { %1504 = vpow2.f32 %v854_v7  ;;  %857 = vadd.xlane.f32.xlu0 %v856_v8 }
 0x6a8   :  { %v1505_v9 = vpop.eup %1504 }
 0x6a9   :  { %v859_v10 = vsel %vm395_vm4, %v1505_v9, 0.0 }
 0x6aa   :  { %860 = vadd.xlane.f32.xlu1 %v859_v10 }
 0x6b0   :  { %v896_v11 = vpop.permute.xlu0 %895 }
 0x6b1   :  { %v901_v13 = vsel %vm425_vm6, %v896_v11, 0 }
 0x6b2   :  { %910 = vmatpush.bf16.msra.mxu3 %v901_v13 }
 0x6b6   :  { %1016 = vrot.lane.b32.xlu0 %v2206_v3, %s1895_s10 }
 0x6f4   :  { %v973_v14 = vpop.xlane.xlu1 %972 }
 0x6f5   :  { %v977_v15 = vsub.f32 %v942_v54, %v973_v14 }
 0x6f7   :  { %v979_v12 = vmul.f32 1.442695, %v977_v15 }
 0x6f9   :  { %1506 = vpow2.f32 %v979_v12 }
 0x6fc   :  { %v976_v17 = vpop.xlane.xlu2 %975 }
 0x6fd   :  { %v978_v18 = vsub.f32 %v968_v57, %v976_v17 }
 0x6ff   :  { %v1507_v19 = vpop.eup %1506  ;;  %v981_v20 = vmul.f32 1.442695, %v978_v18 }
 0x700   :  { %v983_v22 = vsel %vm395_vm4, %v1507_v19, 0.0 }
 0x701   :  { %1508 = vpow2.f32 %v981_v20  ;;  %984 = vadd.xlane.f32.xlu1 %v983_v22  ;;  %v1433_v22 = vld [vmem:[#allocation22 + $0x8] sm:$0xff] }
 0x704   :  { %v872_v23 = vpop.permute.xlu2 %871 }
 0x705   :  { %v877_v24 = vsel %vm425_vm6, %v872_v23, 0 }
 0x706   :  { %886 = vmatpush.bf16.msrb.mxu2 %v877_v24 }
 0x707   :  { %v1509_v25 = vpop.eup %1508 }
 0x708   :  { %v986_v26 = vsel %vm395_vm4, %v1509_v25, 0.0 }
 0x709   :  { %987 = vadd.xlane.f32.xlu1 %v986_v26 }
 0x715   :  { %v858_v3 = vpop.xlane.xlu0 %857 }
 0x716   :  { %1510 = vrcp.f32 %v858_v3 }
 0x71c   :  { %v1511_v27 = vpop.eup %1510 }
 0x71d   :  { %v864_v21 = vmul.f32 %v1511_v27, %v1503_v6  ;;  %v861_v28 = vpop.xlane.xlu1 %860 }
 0x71e   :  { %1512 = vrcp.f32 %v861_v28 }
 0x71f   :  { %v866_v29 = vpack.c.bf16 %v864_v21, %v864_v21 }
 0x721   :  { %1380 = vmatmul.msk.bf16.vlgmr.msrb.gmra.mxu2 %vm395_vm4, %v866_v29 }
 0x722   :  { %995 = vrot.lane.b32.xlu1 %v2201_v2, %s1895_s10 }
 0x724   :  { %v1513_v30 = vpop.eup %1512 }
 0x725   :  { %v865_v31 = vmul.f32 %v1513_v30, %v1505_v9 }
 0x727   :  { %v867_v33 = vpack.c.bf16 %v865_v31, %v865_v31 }
 0x728   :  { %v1017_v34 = vpop.permute.xlu0 %1016 }
 0x729   :  { %v1022_v35 = vsel %vm425_vm6, %v1017_v34, 0  ;;  %1381 = vmatmul.msk.bf16.vlgmr.msra.gmra.mxu3 %vm395_vm4, %v867_v33 }
 0x72a   :  { %1031 = vmatpush.bf16.msrb.mxu3 %v1022_v35 }
 0x774   :  { %v985_v36 = vpop.xlane.xlu1 %984 }
 0x77c   :  { %v988_v37 = vpop.xlane.xlu1 %987 }
 0x77d   :  { %1514 = vrcp.f32 %v988_v37 }
 0x77e   :  { %1516 = vrcp.f32 %v985_v36 }
 0x783   :  { %v1515_v39 = vpop.eup %1514 }
 0x784   :  { %v992_v40 = vmul.f32 %v1515_v39, %v1509_v25  ;;  %v1517_v2 = vpop.eup %1516  ;;  %v1432_v25 = vld [vmem:[#allocation22] sm:$0xff] }
 0x785   :  { %v991_v43 = vmul.f32 %v1517_v2, %v1507_v19 }
 0x786   :  { %v994_v41 = vpack.c.bf16 %v992_v40, %v992_v40  ;;  %v1474_v40 = vld [vmem:[%s2321_s17] ss:$0 sm:$0xff] }
 0x787   :  { %v993_v46 = vpack.c.bf16 %v991_v43, %v991_v43  ;;  %v1475_v43 = vld [vmem:[%s2322_s18] ss:$0 sm:$0xff] }
 0x788   :  { %1385 = vmatmul.msk.bf16.vlgmr.msrb.gmra.mxu3 %vm395_vm4, %v994_v41 }
 0x794   :  { %v996_v44 = vpop.permute.xlu1 %995 }
 0x795   :  { %v1001_v45 = vsel %vm425_vm6, %v996_v44, 0 }
 0x796   :  { %1010 = vmatpush.bf16.msra.mxu2 %v1001_v45 }
 0x799   :  { %1384 = vmatmul.msk.bf16.vlgmr.msra.gmra.mxu2 %vm395_vm4, %v993_v46 }
 0x79a   :  { %1181 = vmatpush.bf16.msrb.mxu2 %v1433_v22 }
 0x79e   :  { %1182 = vmatpush.bf16.msrb.mxu2 %v1432_v25 }
 0x7a4   :  { %v888_v47 = vpop.f32.mrf.mxu2 }
 0x7ac   :  { %v890_v48 = vpop.f32.mrf.mxu2  ;;  %v912_v49 = vpop.f32.mrf.mxu3 }
 0x7ad   :  { %v916_v50 = vpack.c.bf16 %v912_v49, %v888_v47 }
 0x7af   :  { %1395 = vmatmul.msk.bf16.vlgmr.msrb.gmra.mxu1 %vm351_vm1, %v916_v50 }
 0x7b4   :  { %v914_v51 = vpop.f32.mrf.mxu3 }
 0x80b   :  { %v1033_v53 = vpop.f32.mrf.mxu3 }
 0x813   :  { %v1035_v54 = vpop.f32.mrf.mxu3 }
 0x814   :  { %v1436_v54 = vld [vmem:[%s2325_s21 + $0x10] sm:$0xff] }
 0x81c   :  { %v1012_v55 = vpop.f32.mrf.mxu2 }
 0x81d   :  { %v1037_v38 = vpack.c.bf16 %v1033_v53, %v1012_v55  ;;  %v1437_v53 = vld [vmem:[%s2325_s21 + $0x18] sm:$0xff]  ;;  %v1435_v55 = vld [vmem:[%s2325_s21 + $0x8] sm:$0xff] }
 0x81e   :  { %1236 = vmatpush.bf16.msra.mxu3 %v1437_v53 }
 0x81f   :  { %1390 = vmatmul.msk.bf16.vlgmr.msrb.gmra.mxu0 %vm351_vm1, %v1037_v38  ;;  %v1434_v38 = vld [vmem:[%s2325_s21] sm:$0xff] }
 0x822   :  { %1237 = vmatpush.bf16.msra.mxu3 %v1436_v54 }
 0x824   :  { %v1014_v56 = vpop.f32.mrf.mxu2 }
 0x826   :  { %1238 = vmatpush.bf16.msra.mxu3 %v1435_v55 }
 0x82a   :  { %1239 = vmatpush.bf16.msra.mxu3 %v1434_v38 }
 0x82c   :  { %v1081_v57 = vpop.f32.mrf.mxu1 }
 0x834   :  { %v1083_v5 = vpop.f32.mrf.mxu1 }
 0x89c   :  { %v1058_v59 = vpop.f32.mrf.mxu0 }
 0x89d   :  { %v1082_v60 = vadd.f32 %v1081_v57, %v1058_v59  ;;  %v1476_v57 = vld [vmem:[%s2324_s20] ss:$0 sm:$0xff] }
 0x89f   :  { %v1089_v61 = vadd.f32 %v1473_v58, %v1082_v60 }
 0x8a1   :  { %v1091_v62 = vadd.f32 %v1089_v61, %v2192_v1 }
 0x8a3   :  { %v1093_v63 = vsel %vm321_vm0, %v1091_v62, 0.0 }
 0x8a4   :  { %1094 = vadd.xlane.f32.xlu2 %v1093_v63  ;;  %v1060_v6 = vpop.f32.mrf.mxu0 }
 0x8a5   :  { %v1084_v7 = vadd.f32 %v1083_v5, %v1060_v6  ;;  %v1477_v5 = vld [vmem:[%s2326_s22] ss:$0 sm:$0xff] }
 0x8a7   :  { %v1090_v8 = vadd.f32 %v1473_v58, %v1084_v7 }
 0x8a9   :  { %v1092_v9 = vadd.f32 %v1090_v8, %v2195_v4 }
 0x8ab   :  { %v1096_v10 = vsel %vm321_vm0, %v1092_v9, 0.0 }
 0x8ac   :  { %1097 = vadd.xlane.f32.xlu0 %v1096_v10 }
 0x917   :  { %v1095_v11 = vpop.xlane.xlu2 %1094 }
 0x918   :  { %v1099_v13 = vmul.f32 %v1095_v11, %v2169_v16 }
 0x91a   :  { %v1101_v14 = vsub.f32 %v1091_v62, %v1099_v13 }
 0x91c   :  { %v1103_v15 = vmul.f32 %v1101_v14, %v1101_v14 }
 0x91e   :  { %v1105_v12 = vsel %vm321_vm0, %v1103_v15, 0.0 }
 0x91f   :  { %1106 = vadd.xlane.f32.xlu1 %v1105_v12  ;;  %v1098_v1 = vpop.xlane.xlu0 %1097 }
 0x920   :  { %v1100_v17 = vmul.f32 %v1098_v1, %v2169_v16 }
 0x922   :  { %v1102_v18 = vsub.f32 %v1092_v9, %v1100_v17 }
 0x924   :  { %v1104_v19 = vmul.f32 %v1102_v18, %v1102_v18 }
 0x926   :  { %v1108_v20 = vsel %vm321_vm0, %v1104_v19, 0.0 }
 0x927   :  { %1109 = vadd.xlane.f32.xlu2 %v1108_v20 }
 0x992   :  { %v1107_v4 = vpop.xlane.xlu1 %1106 }
 0x993   :  { %v1111_v23 = vmul.f32 %v1107_v4, %v2169_v16 }
 0x995   :  { %v1113_v24 = vadd.f32 1e-05, %v1111_v23 }
 0x997   :  { %1518 = vrsqrt.f32 %v1113_v24  ;;  %vm1121_vm2 = vweird.f32 %v1113_v24 }
 0x99a   :  { %v1110_v26 = vpop.xlane.xlu2 %1109 }
 0x99b   :  { %v1112_v3 = vmul.f32 %v1110_v26, %v2169_v16 }
 0x99d   :  { %v1519_v27 = vpop.eup %1518  ;;  %v1114_v21 = vadd.f32 1e-05, %v1112_v3 }
 0x99e   :  { %v1116_v28 = vmul.f32 %v1519_v27, %v1113_v24  ;;  %vm1122_vm1 = vweird.f32 %v1519_v27 }
 0x99f   :  { %1520 = vrsqrt.f32 %v1114_v21  ;;  %vm1123_vm3 = vmor %vm1121_vm2, %vm1122_vm1  ;;  %vm1131_vm5 = vweird.f32 %v1114_v21 }
 0x9a0   :  { %v1117_v29 = vmul.f32 %v1519_v27, %v1116_v28 }
 0x9a2   :  { %v1118_v30 = vmul.f32 0.5, %v1117_v29 }
 0x9a4   :  { %v1119_v31 = vsub.f32 1.5, %v1118_v30 }
 0x9a5   :  { %v1521_v33 = vpop.eup %1520 }
 0x9a6   :  { %v1120_v34 = vmul.f32 %v1519_v27, %v1119_v31  ;;  %v1126_v35 = vmul.f32 %v1521_v33, %v1114_v21  ;;  %vm1132_vm4 = vweird.f32 %v1521_v33 }
 0x9a7   :  { %vm1133_vm6 = vmor %vm1131_vm5, %vm1132_vm4 }
 0x9a8   :  { %v1124_v36 = vsel %vm1123_vm3, %v1519_v27, %v1120_v34  ;;  %v1127_v37 = vmul.f32 %v1521_v33, %v1126_v35 }
 0x9a9   :  { %v1135_v41 = vmul.f32 %v1124_v36, %v1101_v14 }
 0x9aa   :  { %v1128_v39 = vmul.f32 0.5, %v1127_v37  ;;  %v1478_v37 = vld [vmem:[%s2327_s23] ss:$0 sm:$0xff]  ;;  %s1902_s23 = smov [#allocation23]  }
 0x9ab   :  { %v1141_v44 = vmul.f32 %v1474_v40, %v1135_v41  ;;  %s1312_s13 = sshll.u32 %s1902_s23, 4  ;;  %s1313_s13 = int_to_ptr.vmem [resolvable:$true] %s1312_s13 }
 0x9ac   :  { %v1129_v42 = vsub.f32 1.5, %v1128_v39 }
 0x9ad   :  { %v1147_v47 = vadd.f32 %v1475_v43, %v1141_v44 }
 0x9ae   :  { %v1130_v2 = vmul.f32 %v1521_v33, %v1129_v42 }
 0x9af   :  { %v1149_v50 = vmul.f32 %v1147_v47, %v2185_v32 }
 0x9b0   :  { %v1134_v45 = vsel %vm1133_vm6, %v1521_v33, %v1130_v2 }
 0x9b1   :  { %v1136_v46 = vmul.f32 %v1134_v45, %v1102_v18 }
 0x9b3   :  { %v1142_v48 = vmul.f32 %v1474_v40, %v1136_v46 }
 0x9b5   :  { %v1148_v49 = vadd.f32 %v1475_v43, %v1142_v48 }
 0x9b7   :  { %v1150_v51 = vmul.f32 %v1148_v49, %v2189_v0 }
 0x9b9   :  { %v1151_v52 = vpack.c.bf16 %v1150_v51, %v1149_v50 }
 0x9bb   :  { %1404 = vmatmul.msk.bf16.vlgmr.msrb.gmra.mxu2 %vm321_vm0, %v1151_v52 }
 0xa3e   :  { %v1184_v56 = vpop.f32.mrf.mxu2 }
 0xa3f   :  { %v1185_v58 = vadd.f32 %v1476_v57, %v1184_v56 }
 0xa41   :  { %v1189_v61 = vmax.f32 %v1185_v58, 0.0 }
 0xa46   :  { %v1186_v59 = vpop.f32.mrf.mxu2 }
 0xa47   :  { %v1187_v60 = vadd.f32 %v1476_v57, %v1186_v59 }
 0xa49   :  { %v1190_v62 = vmax.f32 %v1187_v60, 0.0 }
 0xa4b   :  { %v1191_v63 = vpack.c.bf16 %v1190_v62, %v1189_v61 }
 0xa4d   :  { %1421 = vmatmul.msk.bf16.vlgmr.msra.gmra.mxu3 %vm1228_vm7, %v1191_v63 }
 0xad0   :  { %v1241_v6 = vpop.f32.mrf.mxu3 }
 0xad1   :  { %v1242_v7 = vadd.f32 %v1477_v5, %v1241_v6 }
 0xad3   :  { %v1246_v8 = vadd.f32 %v1242_v7, %v1149_v50 }
 0xad5   :  { %v1248_v9 = vsel %vm321_vm0, %v1246_v8, 0.0 }
 0xad6   :  { %1249 = vadd.xlane.f32.xlu2 %v1248_v9 }
 0xad8   :  { %v1243_v10 = vpop.f32.mrf.mxu3 }
 0xad9   :  { %v1244_v11 = vadd.f32 %v1477_v5, %v1243_v10 }
 0xadb   :  { %v1247_v13 = vadd.f32 %v1244_v11, %v1150_v51 }
 0xadd   :  { %v1251_v14 = vsel %vm321_vm0, %v1247_v13, 0.0 }
 0xade   :  { %1252 = vadd.xlane.f32.xlu0 %v1251_v14 }
 0xb49   :  { %v1250_v15 = vpop.xlane.xlu2 %1249 }
 0xb4a   :  { %v1254_v12 = vmul.f32 %v1250_v15, %v2169_v16 }
 0xb4c   :  { %v1256_v1 = vsub.f32 %v1246_v8, %v1254_v12 }
 0xb4e   :  { %v1258_v17 = vmul.f32 %v1256_v1, %v1256_v1 }
 0xb50   :  { %v1260_v18 = vsel %vm321_vm0, %v1258_v17, 0.0 }
 0xb51   :  { %v1253_v19 = vpop.xlane.xlu0 %1252  ;;  %1261 = vadd.xlane.f32.xlu2 %v1260_v18 }
 0xb52   :  { %v1255_v20 = vmul.f32 %v1253_v19, %v2169_v16 }
 0xb54   :  { %v1257_v4 = vsub.f32 %v1247_v13, %v1255_v20 }
 0xb56   :  { %v1259_v22 = vmul.f32 %v1257_v4, %v1257_v4 }
 0xb58   :  { %v1263_v23 = vsel %vm321_vm0, %v1259_v22, 0.0 }
 0xb59   :  { %1264 = vadd.xlane.f32.xlu0 %v1263_v23 }
 0xbc4   :  { %v1262_v24 = vpop.xlane.xlu2 %1261 }
 0xbc5   :  { %v1266_v25 = vmul.f32 %v1262_v24, %v2169_v16 }
 0xbc7   :  { %v1268_v26 = vadd.f32 1e-05, %v1266_v25 }
 0xbc9   :  { %1522 = vrsqrt.f32 %v1268_v26  ;;  %vm1276_vm9 = vweird.f32 %v1268_v26 }
 0xbcc   :  { %v1265_v3 = vpop.xlane.xlu0 %1264 }
 0xbcd   :  { %v1267_v27 = vmul.f32 %v1265_v3, %v2169_v16  ;;  %v1479_v16 = vld [vmem:[%s2328_s24] ss:$0 sm:$0xff] }
 0xbcf   :  { %v1523_v21 = vpop.eup %1522  ;;  %v1269_v28 = vadd.f32 1e-05, %v1267_v27 }
 0xbd0   :  { %v1271_v29 = vmul.f32 %v1523_v21, %v1268_v26  ;;  %vm1277_vm8 = vweird.f32 %v1523_v21 }
 0xbd1   :  { %1524 = vrsqrt.f32 %v1269_v28  ;;  %vm1278_vm10 = vmor %vm1276_vm9, %vm1277_vm8  ;;  %vm1286_vm12 = vweird.f32 %v1269_v28 }
 0xbd2   :  { %v1272_v30 = vmul.f32 %v1523_v21, %v1271_v29 }
 0xbd4   :  { %v1273_v31 = vmul.f32 0.5, %v1272_v30 }
 0xbd6   :  { %v1274_v33 = vsub.f32 1.5, %v1273_v31 }
 0xbd7   :  { %v1525_v34 = vpop.eup %1524 }
 0xbd8   :  { %v1275_v35 = vmul.f32 %v1523_v21, %v1274_v33  ;;  %v1281_v36 = vmul.f32 %v1525_v34, %v1269_v28  ;;  %vm1287_vm11 = vweird.f32 %v1525_v34 }
 0xbd9   :  { %vm1288_vm13 = vmor %vm1286_vm12, %vm1287_vm11 }
 0xbda   :  { %v1279_v39 = vsel %vm1278_vm10, %v1523_v21, %v1275_v35  ;;  %v1282_v40 = vmul.f32 %v1525_v34, %v1281_v36 }
 0xbdb   :  { %v1290_v41 = vmul.f32 %v1279_v39, %v1256_v1 }
 0xbdc   :  { %v1283_v42 = vmul.f32 0.5, %v1282_v40 }
 0xbdd   :  { %v1296_v2 = vmul.f32 %v1478_v37, %v1290_v41 }
 0xbde   :  { %v1284_v43 = vsub.f32 1.5, %v1283_v42 }
 0xbdf   :  { %v1302_v44 = vadd.f32 %v1479_v16, %v1296_v2 }
 0xbe0   :  { %v1285_v45 = vmul.f32 %v1525_v34, %v1284_v43 }
 0xbe1   :  { %v1304_v46 = vmul.f32 %v1302_v44, %v2185_v32 }
 0xbe2   :  { %v1289_v47 = vsel %vm1288_vm13, %v1525_v34, %v1285_v45 }
 0xbe3   :  { %1306 = vst.msk [vmem:[#allocation23] sm:$0xff] %vm321_vm0, %v1304_v46  ;;  %v1291_v48 = vmul.f32 %v1289_v47, %v1257_v4 }
 0xbe5   :  { %v1297_v49 = vmul.f32 %v1478_v37, %v1291_v48 }
 0xbe7   :  { %v1303_v50 = vadd.f32 %v1479_v16, %v1297_v49 }
 0xbe9   :  { %v1305_v51 = vmul.f32 %v1303_v50, %v2189_v0 }
 0xbeb   :  { %1307 = vst.msk [vmem:[#allocation23 + $0x8] sm:$0xff] %vm321_vm0, %v1305_v51 }
 0xbec   :  { %1320 = dma.vmem_to_hbm [thread:$0]  %s1313_s13, 256, %s1315_s15, [#allocation4], %s1903_s19, %s1903_s19, %s1904_s1  }
 0xbed   :  { %1876 = dma.done.wait [#allocation4], 256  }
 0xbee   :  { %1877 = vsyncadd [#allocation4], 4294967040 }
 0xbef   :  { %1325 = vsyncpa [#allocation3], 1 }
 0xbf0   :  { %1326 = vsyncpa [#allocation6], 1 }
 0xbf1   :  { %1327 = vsyncpa [#allocation9], 1 }
 0xbf2   :  { %1328 = vsyncpa [#allocation12], 1 }
 0xbf3   :  { %1329 = vsyncpa [#allocation15], 1 }
 0xbf4   :  { %1330 = vsyncpa [#allocation18], 1 }
 0xbf5   :  { %1331 = vsyncpa [#allocation21], 1 }
 0xbf6   :  { %1332 = vsyncpa [#allocation4], 1 }

</bundles_post_ra>
